<compile_context>
chip_gen: v7x
topology: tpu7x:2x2x1
jax: 0.10.0
libtpu: 0.0.40
codegen_flags: <defaults>
</compile_context>

<pallas_src>
import numpy as np
import jax
import jax.numpy as jnp
from jax.experimental import pallas as pl
from jax.experimental.pallas import tpu as pltpu

# ---------------- tiny Llama config -------------------------------------------
BATCH = 2
SEQ = 8
HIDDEN = 32
N_HEADS = 4
N_KV_HEADS = 2
HEAD_DIM = HIDDEN // N_HEADS                      # 8
REP = N_HEADS // N_KV_HEADS                       # 2
QKV_DIM = (N_HEADS + 2 * N_KV_HEADS) * HEAD_DIM   # 64
QK_DIM = (N_HEADS + N_KV_HEADS) * HEAD_DIM        # 48
KV_DIM = N_KV_HEADS * HEAD_DIM                    # 16
KV_SLAB = 2 * KV_DIM                              # 32  (k|v packed lane-dense)
INTERMEDIATE = 64
VOCAB = 128
N_LAYERS = 2
RMS_EPS = 1e-6
ROPE_BASE = 10000.0
NEG = -1e30
SCALE = 1.0 / (HEAD_DIM ** 0.5)
N_FIXED_IN = 7                                    # x, amask, cos, sin, rot, final_ln, lm_head
N_LAYER_W = 6                                     # input_ln, wqkv, wo, post_ln, w_gu, w_down


# rotate_half(t) == t @ R, R a constant +/-1 matrix; block-diag over all q|k heads.
# Kept in f32 so the RoPE rotation term is exact (MXU handles f32 fine at this size).
def _rotate_half_matrix(d):
    half = d // 2
    r = np.zeros((d, d), np.float32)
    for j in range(half):
        r[j + half, j] = -1.0
        r[j, j + half] = 1.0
    return r


_ROT_QK = jnp.asarray(
    np.kron(np.eye(N_HEADS + N_KV_HEADS, dtype=np.float32),
            _rotate_half_matrix(HEAD_DIM))
).astype(jnp.float32)                             # (QK_DIM, QK_DIM)


def _rms_norm(x, w):
    var = jnp.mean(x * x, axis=-1, keepdims=True)
    return x * jax.lax.rsqrt(var + RMS_EPS) * w


# ---------------- single fused whole-forward kernel ----------------------------
def _fused_forward_kernel(*refs):
    (x_ref, amask_ref, cos_ref, sin_ref, rot_ref, fln_ref, lm_ref) = refs[:N_FIXED_IN]
    lw = refs[N_FIXED_IN:N_FIXED_IN + N_LAYER_W * N_LAYERS]
    logits_ref = refs[N_FIXED_IN + N_LAYER_W * N_LAYERS]
    kv_refs = refs[N_FIXED_IN + N_LAYER_W * N_LAYERS + 1:]

    cos = cos_ref[...]                                       # (S, QK_DIM) f32
    sin = sin_ref[...]
    rot = rot_ref[...]                                       # (QK_DIM, QK_DIM) f32

    # causal + padding mask: built once per grid step, reused across layers
    row = jax.lax.broadcasted_iota(jnp.int32, (SEQ, SEQ), 0)
    col = jax.lax.broadcasted_iota(jnp.int32, (SEQ, SEQ), 1)
    allowed = (col <= row) & (amask_ref[0] > 0.5)            # (S,S) & (1,S)
    mask = jnp.where(allowed, 0.0, NEG)                      # (S, S)
    mask_rep = jnp.concatenate([mask] * REP, axis=0)         # (REP*S, S)

    state = x_ref[0]                                         # (S, H) f32
    k_off = N_HEADS * HEAD_DIM

    for layer in range(N_LAYERS):
        iln, wqkv, wo, pln, wgu, wdown = lw[N_LAYER_W * layer: N_LAYER_W * (layer + 1)]

        # ---- attention block ----
        xn = _rms_norm(state, iln[...])
        qkv = jnp.dot(xn.astype(jnp.bfloat16), wqkv[...],
                      preferred_element_type=jnp.float32)    # (S, QKV_DIM); q cols pre-scaled
        qk = qkv[:, :QK_DIM]
        # RoPE on the whole q|k slab: rotate_half via exact +/-1 f32 matmul
        qk_rot = qk * cos + jnp.dot(qk, rot, preferred_element_type=jnp.float32) * sin
        v_all = qkv[:, QK_DIM:]                              # (S, nKV*D)

        # present-KV: one lane-dense bf16 store [k_all | v_all] -> (S, 32)
        kv_refs[layer][0] = jnp.concatenate(
            [qk_rot[:, k_off:], v_all], axis=-1).astype(jnp.bfloat16)

        qk_bf = qk_rot.astype(jnp.bfloat16)                  # hoisted casts (once per layer)
        v_bf = v_all.astype(jnp.bfloat16)

        ctx_heads = []
        for kh in range(N_KV_HEADS):
            k_h = qk_bf[:, k_off + kh * HEAD_DIM: k_off + (kh + 1) * HEAD_DIM]
            v_h = v_bf[:, kh * HEAD_DIM: (kh + 1) * HEAD_DIM]
            # stack the REP query heads sharing this KV head along rows -> one QK^T, one PV
            q_stack = jnp.concatenate(
                [qk_bf[:, (kh * REP + r) * HEAD_DIM: (kh * REP + r + 1) * HEAD_DIM]
                 for r in range(REP)], axis=0)               # (REP*S, D)
            s = jax.lax.dot_general(q_stack, k_h, (((1,), (1,)), ((), ())),
                                    preferred_element_type=jnp.float32)  # (REP*S, S)
            s = s + mask_rep                                 # 1/sqrt(D) already folded in
            m = jnp.max(s, axis=-1, keepdims=True)
            p = jnp.exp(s - m)
            p = p / jnp.sum(p, axis=-1, keepdims=True)       # exact divide (matches reference)
            ctx = jnp.dot(p.astype(jnp.bfloat16), v_h,
                          preferred_element_type=jnp.float32)  # (REP*S, D)
            for r in range(REP):
                ctx_heads.append(ctx[r * SEQ:(r + 1) * SEQ, :])

        # concat heads (h = 0..N_HEADS-1 order) -> ONE output-projection matmul
        attn_ctx = jnp.concatenate(ctx_heads, axis=-1)       # (S, H)
        state = state + jnp.dot(attn_ctx.astype(jnp.bfloat16), wo[...],
                                preferred_element_type=jnp.float32)

        # ---- MLP block ----
        hn = _rms_norm(state, pln[...])
        gu = jnp.dot(hn.astype(jnp.bfloat16), wgu[...],
                     preferred_element_type=jnp.float32)     # (S, 2*I) lane-dense
        gate = gu[:, :INTERMEDIATE]
        up = gu[:, INTERMEDIATE:]
        act = (gate * jax.nn.sigmoid(gate)) * up             # SwiGLU in f32 (v5e-safe)
        state = state + jnp.dot(act.astype(jnp.bfloat16), wdown[...],
                                preferred_element_type=jnp.float32)

    # ---- final norm + lm_head ----
    fn = _rms_norm(state, fln_ref[...])
    logits_ref[0] = jnp.dot(fn.astype(jnp.bfloat16), lm_ref[...],
                            preferred_element_type=jnp.float32)   # (S, VOCAB=128) lane-dense


def fused_forward(hidden, amask3d, cos_qk, sin_qk, rot_qk, final_ln, lm_head, layer_weights):
    B, S, H = hidden.shape
    const2d = lambda b: (0, 0)

    in_specs = [
        pl.BlockSpec((1, S, H), lambda b: (b, 0, 0)),        # hidden (per batch)
        pl.BlockSpec((1, 1, S), lambda b: (b, 0, 0)),        # attention mask row
        pl.BlockSpec((S, QK_DIM), const2d),                  # cos
        pl.BlockSpec((S, QK_DIM), const2d),                  # sin
        pl.BlockSpec((QK_DIM, QK_DIM), const2d),             # rotate_half matrix
        pl.BlockSpec((1, H), const2d),                       # final_ln
        pl.BlockSpec((H, VOCAB), const2d),                   # lm_head
    ]
    for _ in range(N_LAYERS):
        in_specs += [
            pl.BlockSpec((1, H), const2d),                   # input_ln
            pl.BlockSpec((H, QKV_DIM), const2d),             # wqkv (q cols pre-scaled)
            pl.BlockSpec((H, H), const2d),                   # wo
            pl.BlockSpec((1, H), const2d),                   # post_ln
            pl.BlockSpec((H, 2 * INTERMEDIATE), const2d),    # w_gate|w_up
            pl.BlockSpec((INTERMEDIATE, H), const2d),        # w_down
        ]

    out_shapes = [jax.ShapeDtypeStruct((B, S, VOCAB), jnp.float32)]
    out_specs = [pl.BlockSpec((1, S, VOCAB), lambda b: (b, 0, 0))]
    for _ in range(N_LAYERS):
        out_shapes.append(jax.ShapeDtypeStruct((B, S, KV_SLAB), jnp.bfloat16))
        out_specs.append(pl.BlockSpec((1, S, KV_SLAB), lambda b: (b, 0, 0)))

    return pl.pallas_call(
        _fused_forward_kernel,
        out_shape=tuple(out_shapes),
        grid=(B,),
        in_specs=in_specs,
        out_specs=tuple(out_specs),
        compiler_params=pltpu.CompilerParams(dimension_semantics=("parallel",)),
    )(hidden, amask3d, cos_qk, sin_qk, rot_qk, final_ln, lm_head, *layer_weights)


# ---------------- RoPE tables (XLA, trace-time constants under jit) -------------
def rope_tables(seq_len, head_dim, base=ROPE_BASE):
    inv_freq = 1.0 / (base ** (jnp.arange(0, head_dim, 2, dtype=jnp.float32) / head_dim))
    pos = jnp.arange(seq_len, dtype=jnp.float32)
    freqs = pos[:, None] * inv_freq[None, :]                  # (S, D/2)
    emb = jnp.concatenate([freqs, freqs], axis=-1)            # (S, D)
    cos, sin = jnp.cos(emb), jnp.sin(emb)
    cos_qk = jnp.tile(cos, (1, N_HEADS + N_KV_HEADS))         # (S, QK_DIM)
    sin_qk = jnp.tile(sin, (1, N_HEADS + N_KV_HEADS))
    return cos_qk, sin_qk


# ---------------- full forward (LlamaModelWrapper, use_cache=False path) --------
def llama_wrapper_forward(params, input_ids, attention_mask):
    B, S = input_ids.shape
    # TODO(synk): embedding gather stays in XLA; use_cache=True single-token decode
    # (DynamicCache append) is host-side list bookkeeping and is not kernelized.
    hidden = jnp.take(params["embed_tokens"], input_ids, axis=0).astype(jnp.float32)
    amask3d = attention_mask.astype(jnp.float32).reshape(B, 1, S)
    cos_qk, sin_qk = rope_tables(S, HEAD_DIM)

    layer_weights = []
    for layer in params["layers"]:
        layer_weights += [layer["input_ln"], layer["wqkv"], layer["wo"],
                          layer["post_ln"], layer["w_gu"], layer["w_down"]]

    outs = fused_forward(hidden, amask3d, cos_qk, sin_qk, _ROT_QK,
                         params["final_ln"], params["lm_head"], layer_weights)

    logits = outs[0]
    present_kv = []
    for layer in range(N_LAYERS):
        kv = outs[1 + layer]                                  # (B, S, 32) bf16, [k|v]
        k = kv[..., :KV_DIM].reshape(B, S, N_KV_HEADS, HEAD_DIM).transpose(0, 2, 1, 3)
        v = kv[..., KV_DIM:].reshape(B, S, N_KV_HEADS, HEAD_DIM).transpose(0, 2, 1, 3)
        present_kv += [k, v]                                  # legacy-cache [k0, v0, k1, v1]
    return [logits] + present_kv


forward = jax.jit(llama_wrapper_forward)


# ---------------- deterministic parameter init ----------------------------------
def init_params(key):
    def dense(k, shape, scale=0.02):
        return scale * jax.random.normal(k, shape, dtype=jnp.float32)

    keys = jax.random.split(key, 2 + 8 * N_LAYERS)
    params = {
        "embed_tokens": dense(keys[0], (VOCAB, HIDDEN)),
        "lm_head": dense(keys[1], (HIDDEN, VOCAB)).astype(jnp.bfloat16),
        "final_ln": jnp.ones((1, HIDDEN), jnp.float32),
        "layers": [],
    }
    idx = 2
    for _ in range(N_LAYERS):
        lk = keys[idx:idx + 8]
        idx += 8
        wq = dense(lk[0], (HIDDEN, N_HEADS * HEAD_DIM))
        wk = dense(lk[1], (HIDDEN, N_KV_HEADS * HEAD_DIM))
        wv = dense(lk[2], (HIDDEN, N_KV_HEADS * HEAD_DIM))
        wo = dense(lk[3], (N_HEADS * HEAD_DIM, HIDDEN))
        w_gate = dense(lk[4], (HIDDEN, INTERMEDIATE))
        w_up = dense(lk[5], (HIDDEN, INTERMEDIATE))
        w_down = dense(lk[6], (INTERMEDIATE, HIDDEN))
        params["layers"].append({
            "input_ln": jnp.ones((1, HIDDEN), jnp.float32),
            "post_ln": jnp.ones((1, HIDDEN), jnp.float32),
            # fused projections, stored (in, out) so y = x @ W; bf16 for the MXU path.
            # 1/sqrt(head_dim) folded into the q columns (free at init time).
            "wqkv": jnp.concatenate([wq * SCALE, wk, wv], axis=1).astype(jnp.bfloat16),
            "wo": wo.astype(jnp.bfloat16),
            "w_gu": jnp.concatenate([w_gate, w_up], axis=1).astype(jnp.bfloat16),
            "w_down": w_down.astype(jnp.bfloat16),
        })
    return params


if __name__ == "__main__":
    root = jax.random.PRNGKey(0)
    k_params, k_ids = jax.random.split(root)
    params = init_params(k_params)

    input_ids = jax.random.randint(k_ids, (BATCH, SEQ), 0, VOCAB, dtype=jnp.int32)
    attention_mask = jnp.ones((BATCH, SEQ), dtype=jnp.int32)

    outputs = forward(params, input_ids, attention_mask)
    outputs = jax.block_until_ready(outputs)

    logits = outputs[0]
    assert logits.shape == (BATCH, SEQ, VOCAB)
    assert len(outputs) == 1 + 2 * N_LAYERS
    for kv in outputs[1:]:
        assert kv.shape == (BATCH, N_KV_HEADS, SEQ, HEAD_DIM)
    assert bool(jnp.all(jnp.isfinite(logits)))
    print("KERNEL_OK")
</pallas_src>

<mosaic_0001>
module attributes {stable_mosaic.version = 11 : i64} {
  func.func @_fused_forward_kernel(%arg0: i32, %arg1: memref<1x8x32xf32, #tpu.memory_space<vmem>>, %arg2: memref<1x1x8xf32, #tpu.memory_space<vmem>>, %arg3: memref<8x48xf32, #tpu.memory_space<vmem>>, %arg4: memref<8x48xf32, #tpu.memory_space<vmem>>, %arg5: memref<48x48xf32, #tpu.memory_space<vmem>>, %arg6: memref<1x32xf32, #tpu.memory_space<vmem>>, %arg7: memref<32x128xbf16, #tpu.memory_space<vmem>>, %arg8: memref<1x32xf32, #tpu.memory_space<vmem>>, %arg9: memref<32x64xbf16, #tpu.memory_space<vmem>>, %arg10: memref<32x32xbf16, #tpu.memory_space<vmem>>, %arg11: memref<1x32xf32, #tpu.memory_space<vmem>>, %arg12: memref<32x128xbf16, #tpu.memory_space<vmem>>, %arg13: memref<64x32xbf16, #tpu.memory_space<vmem>>, %arg14: memref<1x32xf32, #tpu.memory_space<vmem>>, %arg15: memref<32x64xbf16, #tpu.memory_space<vmem>>, %arg16: memref<32x32xbf16, #tpu.memory_space<vmem>>, %arg17: memref<1x32xf32, #tpu.memory_space<vmem>>, %arg18: memref<32x128xbf16, #tpu.memory_space<vmem>>, %arg19: memref<64x32xbf16, #tpu.memory_space<vmem>>, %arg20: memref<1x8x128xf32, #tpu.memory_space<vmem>>, %arg21: memref<1x8x32xbf16, #tpu.memory_space<vmem>>, %arg22: memref<1x8x32xbf16, #tpu.memory_space<vmem>>) attributes {dimension_semantics = [#tpu.dimension_semantics<parallel>], iteration_bounds = array<i64: 2>, scalar_prefetch = 0 : i64, scratch_operands = 0 : i64, tpu.core_type = #tpu.core_type<tc>, window_params = [{transform_indices = @transform_0, window_bounds = array<i64: 1, 8, 32>}, {transform_indices = @transform_1, window_bounds = array<i64: 1, 1, 8>}, {pipeline_mode = #tpu.pipeline_mode<synchronous>, transform_indices = @transform_2, window_bounds = array<i64: 8, 48>}, {pipeline_mode = #tpu.pipeline_mode<synchronous>, transform_indices = @transform_3, window_bounds = array<i64: 8, 48>}, {pipeline_mode = #tpu.pipeline_mode<synchronous>, transform_indices = @transform_4, window_bounds = array<i64: 48, 48>}, {pipeline_mode = #tpu.pipeline_mode<synchronous>, transform_indices = @transform_5, window_bounds = array<i64: 1, 32>}, {pipeline_mode = #tpu.pipeline_mode<synchronous>, transform_indices = @transform_6, window_bounds = array<i64: 32, 128>}, {pipeline_mode = #tpu.pipeline_mode<synchronous>, transform_indices = @transform_7, window_bounds = array<i64: 1, 32>}, {pipeline_mode = #tpu.pipeline_mode<synchronous>, transform_indices = @transform_8, window_bounds = array<i64: 32, 64>}, {pipeline_mode = #tpu.pipeline_mode<synchronous>, transform_indices = @transform_9, window_bounds = array<i64: 32, 32>}, {pipeline_mode = #tpu.pipeline_mode<synchronous>, transform_indices = @transform_10, window_bounds = array<i64: 1, 32>}, {pipeline_mode = #tpu.pipeline_mode<synchronous>, transform_indices = @transform_11, window_bounds = array<i64: 32, 128>}, {pipeline_mode = #tpu.pipeline_mode<synchronous>, transform_indices = @transform_12, window_bounds = array<i64: 64, 32>}, {pipeline_mode = #tpu.pipeline_mode<synchronous>, transform_indices = @transform_13, window_bounds = array<i64: 1, 32>}, {pipeline_mode = #tpu.pipeline_mode<synchronous>, transform_indices = @transform_14, window_bounds = array<i64: 32, 64>}, {pipeline_mode = #tpu.pipeline_mode<synchronous>, transform_indices = @transform_15, window_bounds = array<i64: 32, 32>}, {pipeline_mode = #tpu.pipeline_mode<synchronous>, transform_indices = @transform_16, window_bounds = array<i64: 1, 32>}, {pipeline_mode = #tpu.pipeline_mode<synchronous>, transform_indices = @transform_17, window_bounds = array<i64: 32, 128>}, {pipeline_mode = #tpu.pipeline_mode<synchronous>, transform_indices = @transform_18, window_bounds = array<i64: 64, 32>}, {transform_indices = @transform_19, window_bounds = array<i64: 1, 8, 128>}, {transform_indices = @transform_20, window_bounds = array<i64: 1, 8, 32>}, {transform_indices = @transform_21, window_bounds = array<i64: 1, 8, 32>}]} {
    %c0 = arith.constant 0 : index
    %c0_0 = arith.constant 0 : index
    %0 = vector.load %arg3[%c0, %c0_0] : memref<8x48xf32, #tpu.memory_space<vmem>>, vector<8x48xf32>
    %c0_1 = arith.constant 0 : index
    %c0_2 = arith.constant 0 : index
    %1 = vector.load %arg4[%c0_1, %c0_2] : memref<8x48xf32, #tpu.memory_space<vmem>>, vector<8x48xf32>
    %c0_3 = arith.constant 0 : index
    %c0_4 = arith.constant 0 : index
    %2 = vector.load %arg5[%c0_3, %c0_4] : memref<48x48xf32, #tpu.memory_space<vmem>>, vector<48x48xf32>
    %3 = tpu.iota {dimensions = array<i32: 0>} : vector<8x8xi32>
    %4 = tpu.iota {dimensions = array<i32: 1>} : vector<8x8xi32>
    %5 = arith.cmpi sle, %4, %3 : vector<8x8xi32>
    %c0_5 = arith.constant 0 : index
    %c0_6 = arith.constant 0 : index
    %c0_7 = arith.constant 0 : index
    %6 = vector.load %arg2[%c0_5, %c0_6, %c0_7] : memref<1x1x8xf32, #tpu.memory_space<vmem>>, vector<1x1x8xf32>
    %7 = vector.shape_cast %6 : vector<1x1x8xf32> to vector<1x8xf32>
    %cst = arith.constant 5.000000e-01 : f32
    %8 = vector.broadcast %cst : f32 to vector<1x8xf32>
    %9 = arith.cmpf ogt, %7, %8 : vector<1x8xf32>
    %10 = vector.broadcast %9 : vector<1x8xi1> to vector<8x8xi1>
    %11 = arith.andi %5, %10 : vector<8x8xi1>
    %cst_8 = arith.constant 0.000000e+00 : f32
    %cst_9 = arith.constant -1.000000e+30 : f32
    %12 = vector.broadcast %cst_8 : f32 to vector<8x8xf32>
    %13 = vector.broadcast %cst_9 : f32 to vector<8x8xf32>
    %14 = arith.select %11, %12, %13 : vector<8x8xi1>, vector<8x8xf32>
    %15 = tpu.concatenate %14, %14 in 0 : vector<8x8xf32>, vector<8x8xf32> -> vector<16x8xf32>
    %c0_10 = arith.constant 0 : index
    %c0_11 = arith.constant 0 : index
    %c0_12 = arith.constant 0 : index
    %16 = vector.load %arg1[%c0_10, %c0_11, %c0_12] : memref<1x8x32xf32, #tpu.memory_space<vmem>>, vector<1x8x32xf32>
    %17 = vector.shape_cast %16 : vector<1x8x32xf32> to vector<8x32xf32>
    %c0_13 = arith.constant 0 : index
    %c0_14 = arith.constant 0 : index
    %18 = vector.load %arg8[%c0_13, %c0_14] : memref<1x32xf32, #tpu.memory_space<vmem>>, vector<1x32xf32>
    %19 = arith.mulf %17, %17 : vector<8x32xf32>
    %cst_15 = arith.constant dense<0.000000e+00> : vector<8xf32>
    %20 = vector.multi_reduction <add>, %19, %cst_15 [1] : vector<8x32xf32> to vector<8xf32>
    %21 = vector.shape_cast %20 : vector<8xf32> to vector<8x1xf32>
    %cst_16 = arith.constant 3.200000e+01 : f32
    %22 = vector.broadcast %cst_16 : f32 to vector<8x1xf32>
    %23 = arith.divf %21, %22 : vector<8x1xf32>
    %cst_17 = arith.constant 9.99999997E-7 : f32
    %24 = vector.broadcast %cst_17 : f32 to vector<8x1xf32>
    %25 = arith.addf %23, %24 : vector<8x1xf32>
    %26 = math.rsqrt %25 : vector<8x1xf32>
    %27 = vector.broadcast %26 : vector<8x1xf32> to vector<8x32xf32>
    %28 = arith.mulf %17, %27 : vector<8x32xf32>
    %29 = vector.broadcast %18 : vector<1x32xf32> to vector<8x32xf32>
    %30 = arith.mulf %28, %29 : vector<8x32xf32>
    %31 = arith.truncf %30 : vector<8x32xf32> to vector<8x32xbf16>
    %c0_18 = arith.constant 0 : index
    %c0_19 = arith.constant 0 : index
    %32 = vector.load %arg9[%c0_18, %c0_19] : memref<32x64xbf16, #tpu.memory_space<vmem>>, vector<32x64xbf16>
    %cst_20 = arith.constant dense<0.000000e+00> : vector<8x64xf32>
    %33 = tpu.matmul %31, %32, %cst_20 {dimension_numbers = #tpu.dot_dimension_numbers<[1], [0], [0], [1], [0, 0, 1, 1], [], []>} : vector<8x32xbf16>, vector<32x64xbf16>, vector<8x64xf32> -> vector<8x64xf32>
    %34 = vector.extract_strided_slice %33 {offsets = [0, 0], sizes = [8, 48], strides = [1, 1]} : vector<8x64xf32> to vector<8x48xf32>
    %35 = arith.mulf %34, %0 : vector<8x48xf32>
    %cst_21 = arith.constant dense<0.000000e+00> : vector<8x48xf32>
    %36 = tpu.matmul %34, %2, %cst_21 {dimension_numbers = #tpu.dot_dimension_numbers<[1], [0], [0], [1], [0, 0, 1, 1], [], []>} : vector<8x48xf32>, vector<48x48xf32>, vector<8x48xf32> -> vector<8x48xf32>
    %37 = arith.mulf %36, %1 : vector<8x48xf32>
    %38 = arith.addf %35, %37 : vector<8x48xf32>
    %39 = vector.extract_strided_slice %33 {offsets = [0, 48], sizes = [8, 16], strides = [1, 1]} : vector<8x64xf32> to vector<8x16xf32>
    %40 = vector.extract_strided_slice %38 {offsets = [0, 32], sizes = [8, 16], strides = [1, 1]} : vector<8x48xf32> to vector<8x16xf32>
    %41 = tpu.concatenate %40, %39 in 1 : vector<8x16xf32>, vector<8x16xf32> -> vector<8x32xf32>
    %42 = arith.truncf %41 : vector<8x32xf32> to vector<8x32xbf16>
    %c0_22 = arith.constant 0 : index
    %c0_23 = arith.constant 0 : index
    %c0_24 = arith.constant 0 : index
    %43 = vector.load %arg21[%c0_22, %c0_23, %c0_24] : memref<1x8x32xbf16, #tpu.memory_space<vmem>>, vector<1x8x32xbf16>
    %44 = vector.shape_cast %43 : vector<1x8x32xbf16> to vector<8x32xbf16>
    %45 = vector.shape_cast %42 : vector<8x32xbf16> to vector<1x8x32xbf16>
    tpu.vector_store %arg21[%c0_22, %c0_23, %c0_24], %45 {strides = array<i32>} : memref<1x8x32xbf16, #tpu.memory_space<vmem>>, vector<1x8x32xbf16>,
    %46 = arith.truncf %38 : vector<8x48xf32> to vector<8x48xbf16>
    %47 = arith.truncf %39 : vector<8x16xf32> to vector<8x16xbf16>
    %48 = vector.extract_strided_slice %46 {offsets = [0, 32], sizes = [8, 8], strides = [1, 1]} : vector<8x48xbf16> to vector<8x8xbf16>
    %49 = vector.extract_strided_slice %47 {offsets = [0, 0], sizes = [8, 8], strides = [1, 1]} : vector<8x16xbf16> to vector<8x8xbf16>
    %50 = vector.extract_strided_slice %46 {offsets = [0, 0], sizes = [8, 8], strides = [1, 1]} : vector<8x48xbf16> to vector<8x8xbf16>
    %51 = vector.extract_strided_slice %46 {offsets = [0, 8], sizes = [8, 8], strides = [1, 1]} : vector<8x48xbf16> to vector<8x8xbf16>
    %52 = tpu.concatenate %50, %51 in 0 : vector<8x8xbf16>, vector<8x8xbf16> -> vector<16x8xbf16>
    %cst_25 = arith.constant dense<0.000000e+00> : vector<16x8xf32>
    %53 = tpu.matmul %52, %48, %cst_25 {dimension_numbers = #tpu.dot_dimension_numbers<[1], [1], [0], [0], [0, 0, 1, 0], [], []>} : vector<16x8xbf16>, vector<8x8xbf16>, vector<16x8xf32> -> vector<16x8xf32>
    %54 = arith.addf %53, %15 : vector<16x8xf32>
    %cst_26 = arith.constant dense<0xFF800000> : vector<16xf32>
    %55 = vector.multi_reduction <maximumf>, %54, %cst_26 [1] : vector<16x8xf32> to vector<16xf32>
    %56 = vector.shape_cast %55 : vector<16xf32> to vector<16x1xf32>
    %57 = vector.broadcast %56 : vector<16x1xf32> to vector<16x8xf32>
    %58 = arith.subf %54, %57 : vector<16x8xf32>
    %59 = math.exp %58 : vector<16x8xf32>
    %cst_27 = arith.constant dense<0.000000e+00> : vector<16xf32>
    %60 = vector.multi_reduction <add>, %59, %cst_27 [1] : vector<16x8xf32> to vector<16xf32>
    %61 = vector.shape_cast %60 : vector<16xf32> to vector<16x1xf32>
    %62 = vector.broadcast %61 : vector<16x1xf32> to vector<16x8xf32>
    %63 = arith.divf %59, %62 : vector<16x8xf32>
    %64 = arith.truncf %63 : vector<16x8xf32> to vector<16x8xbf16>
    %cst_28 = arith.constant dense<0.000000e+00> : vector<16x8xf32>
    %65 = tpu.matmul %64, %49, %cst_28 {dimension_numbers = #tpu.dot_dimension_numbers<[1], [0], [0], [1], [0, 0, 1, 1], [], []>} : vector<16x8xbf16>, vector<8x8xbf16>, vector<16x8xf32> -> vector<16x8xf32>
    %66 = vector.extract_strided_slice %65 {offsets = [0, 0], sizes = [8, 8], strides = [1, 1]} : vector<16x8xf32> to vector<8x8xf32>
    %67 = vector.extract_strided_slice %65 {offsets = [8, 0], sizes = [8, 8], strides = [1, 1]} : vector<16x8xf32> to vector<8x8xf32>
    %68 = vector.extract_strided_slice %46 {offsets = [0, 40], sizes = [8, 8], strides = [1, 1]} : vector<8x48xbf16> to vector<8x8xbf16>
    %69 = vector.extract_strided_slice %47 {offsets = [0, 8], sizes = [8, 8], strides = [1, 1]} : vector<8x16xbf16> to vector<8x8xbf16>
    %70 = vector.extract_strided_slice %46 {offsets = [0, 16], sizes = [8, 8], strides = [1, 1]} : vector<8x48xbf16> to vector<8x8xbf16>
    %71 = vector.extract_strided_slice %46 {offsets = [0, 24], sizes = [8, 8], strides = [1, 1]} : vector<8x48xbf16> to vector<8x8xbf16>
    %72 = tpu.concatenate %70, %71 in 0 : vector<8x8xbf16>, vector<8x8xbf16> -> vector<16x8xbf16>
    %cst_29 = arith.constant dense<0.000000e+00> : vector<16x8xf32>
    %73 = tpu.matmul %72, %68, %cst_29 {dimension_numbers = #tpu.dot_dimension_numbers<[1], [1], [0], [0], [0, 0, 1, 0], [], []>} : vector<16x8xbf16>, vector<8x8xbf16>, vector<16x8xf32> -> vector<16x8xf32>
    %74 = arith.addf %73, %15 : vector<16x8xf32>
    %cst_30 = arith.constant dense<0xFF800000> : vector<16xf32>
    %75 = vector.multi_reduction <maximumf>, %74, %cst_30 [1] : vector<16x8xf32> to vector<16xf32>
    %76 = vector.shape_cast %75 : vector<16xf32> to vector<16x1xf32>
    %77 = vector.broadcast %76 : vector<16x1xf32> to vector<16x8xf32>
    %78 = arith.subf %74, %77 : vector<16x8xf32>
    %79 = math.exp %78 : vector<16x8xf32>
    %cst_31 = arith.constant dense<0.000000e+00> : vector<16xf32>
    %80 = vector.multi_reduction <add>, %79, %cst_31 [1] : vector<16x8xf32> to vector<16xf32>
    %81 = vector.shape_cast %80 : vector<16xf32> to vector<16x1xf32>
    %82 = vector.broadcast %81 : vector<16x1xf32> to vector<16x8xf32>
    %83 = arith.divf %79, %82 : vector<16x8xf32>
    %84 = arith.truncf %83 : vector<16x8xf32> to vector<16x8xbf16>
    %cst_32 = arith.constant dense<0.000000e+00> : vector<16x8xf32>
    %85 = tpu.matmul %84, %69, %cst_32 {dimension_numbers = #tpu.dot_dimension_numbers<[1], [0], [0], [1], [0, 0, 1, 1], [], []>} : vector<16x8xbf16>, vector<8x8xbf16>, vector<16x8xf32> -> vector<16x8xf32>
    %86 = vector.extract_strided_slice %85 {offsets = [0, 0], sizes = [8, 8], strides = [1, 1]} : vector<16x8xf32> to vector<8x8xf32>
    %87 = vector.extract_strided_slice %85 {offsets = [8, 0], sizes = [8, 8], strides = [1, 1]} : vector<16x8xf32> to vector<8x8xf32>
    %88 = tpu.concatenate %66, %67, %86, %87 in 1 : vector<8x8xf32>, vector<8x8xf32>, vector<8x8xf32>, vector<8x8xf32> -> vector<8x32xf32>
    %89 = arith.truncf %88 : vector<8x32xf32> to vector<8x32xbf16>
    %c0_33 = arith.constant 0 : index
    %c0_34 = arith.constant 0 : index
    %90 = vector.load %arg10[%c0_33, %c0_34] : memref<32x32xbf16, #tpu.memory_space<vmem>>, vector<32x32xbf16>
    %cst_35 = arith.constant dense<0.000000e+00> : vector<8x32xf32>
    %91 = tpu.matmul %89, %90, %cst_35 {dimension_numbers = #tpu.dot_dimension_numbers<[1], [0], [0], [1], [0, 0, 1, 1], [], []>} : vector<8x32xbf16>, vector<32x32xbf16>, vector<8x32xf32> -> vector<8x32xf32>
    %92 = arith.addf %17, %91 : vector<8x32xf32>
    %c0_36 = arith.constant 0 : index
    %c0_37 = arith.constant 0 : index
    %93 = vector.load %arg11[%c0_36, %c0_37] : memref<1x32xf32, #tpu.memory_space<vmem>>, vector<1x32xf32>
    %94 = arith.mulf %92, %92 : vector<8x32xf32>
    %cst_38 = arith.constant dense<0.000000e+00> : vector<8xf32>
    %95 = vector.multi_reduction <add>, %94, %cst_38 [1] : vector<8x32xf32> to vector<8xf32>
    %96 = vector.shape_cast %95 : vector<8xf32> to vector<8x1xf32>
    %cst_39 = arith.constant 3.200000e+01 : f32
    %97 = vector.broadcast %cst_39 : f32 to vector<8x1xf32>
    %98 = arith.divf %96, %97 : vector<8x1xf32>
    %cst_40 = arith.constant 9.99999997E-7 : f32
    %99 = vector.broadcast %cst_40 : f32 to vector<8x1xf32>
    %100 = arith.addf %98, %99 : vector<8x1xf32>
    %101 = math.rsqrt %100 : vector<8x1xf32>
    %102 = vector.broadcast %101 : vector<8x1xf32> to vector<8x32xf32>
    %103 = arith.mulf %92, %102 : vector<8x32xf32>
    %104 = vector.broadcast %93 : vector<1x32xf32> to vector<8x32xf32>
    %105 = arith.mulf %103, %104 : vector<8x32xf32>
    %106 = arith.truncf %105 : vector<8x32xf32> to vector<8x32xbf16>
    %c0_41 = arith.constant 0 : index
    %c0_42 = arith.constant 0 : index
    %107 = vector.load %arg12[%c0_41, %c0_42] : memref<32x128xbf16, #tpu.memory_space<vmem>>, vector<32x128xbf16>
    %cst_43 = arith.constant dense<0.000000e+00> : vector<8x128xf32>
    %108 = tpu.matmul %106, %107, %cst_43 {dimension_numbers = #tpu.dot_dimension_numbers<[1], [0], [0], [1], [0, 0, 1, 1], [], []>} : vector<8x32xbf16>, vector<32x128xbf16>, vector<8x128xf32> -> vector<8x128xf32>
    %109 = vector.extract_strided_slice %108 {offsets = [0, 0], sizes = [8, 64], strides = [1, 1]} : vector<8x128xf32> to vector<8x64xf32>
    %110 = vector.extract_strided_slice %108 {offsets = [0, 64], sizes = [8, 64], strides = [1, 1]} : vector<8x128xf32> to vector<8x64xf32>
    %111 = arith.negf %109 : vector<8x64xf32>
    %112 = math.exp %111 : vector<8x64xf32>
    %cst_44 = arith.constant 1.000000e+00 : f32
    %113 = vector.broadcast %cst_44 : f32 to vector<8x64xf32>
    %114 = arith.addf %113, %112 : vector<8x64xf32>
    %115 = arith.divf %113, %114 : vector<8x64xf32>
    %116 = arith.mulf %109, %115 : vector<8x64xf32>
    %117 = arith.mulf %116, %110 : vector<8x64xf32>
    %118 = arith.truncf %117 : vector<8x64xf32> to vector<8x64xbf16>
    %c0_45 = arith.constant 0 : index
    %c0_46 = arith.constant 0 : index
    %119 = vector.load %arg13[%c0_45, %c0_46] : memref<64x32xbf16, #tpu.memory_space<vmem>>, vector<64x32xbf16>
    %cst_47 = arith.constant dense<0.000000e+00> : vector<8x32xf32>
    %120 = tpu.matmul %118, %119, %cst_47 {dimension_numbers = #tpu.dot_dimension_numbers<[1], [0], [0], [1], [0, 0, 1, 1], [], []>} : vector<8x64xbf16>, vector<64x32xbf16>, vector<8x32xf32> -> vector<8x32xf32>
    %121 = arith.addf %92, %120 : vector<8x32xf32>
    %c0_48 = arith.constant 0 : index
    %c0_49 = arith.constant 0 : index
    %122 = vector.load %arg14[%c0_48, %c0_49] : memref<1x32xf32, #tpu.memory_space<vmem>>, vector<1x32xf32>
    %123 = arith.mulf %121, %121 : vector<8x32xf32>
    %cst_50 = arith.constant dense<0.000000e+00> : vector<8xf32>
    %124 = vector.multi_reduction <add>, %123, %cst_50 [1] : vector<8x32xf32> to vector<8xf32>
    %125 = vector.shape_cast %124 : vector<8xf32> to vector<8x1xf32>
    %cst_51 = arith.constant 3.200000e+01 : f32
    %126 = vector.broadcast %cst_51 : f32 to vector<8x1xf32>
    %127 = arith.divf %125, %126 : vector<8x1xf32>
    %cst_52 = arith.constant 9.99999997E-7 : f32
    %128 = vector.broadcast %cst_52 : f32 to vector<8x1xf32>
    %129 = arith.addf %127, %128 : vector<8x1xf32>
    %130 = math.rsqrt %129 : vector<8x1xf32>
    %131 = vector.broadcast %130 : vector<8x1xf32> to vector<8x32xf32>
    %132 = arith.mulf %121, %131 : vector<8x32xf32>
    %133 = vector.broadcast %122 : vector<1x32xf32> to vector<8x32xf32>
    %134 = arith.mulf %132, %133 : vector<8x32xf32>
    %135 = arith.truncf %134 : vector<8x32xf32> to vector<8x32xbf16>
    %c0_53 = arith.constant 0 : index
    %c0_54 = arith.constant 0 : index
    %136 = vector.load %arg15[%c0_53, %c0_54] : memref<32x64xbf16, #tpu.memory_space<vmem>>, vector<32x64xbf16>
    %cst_55 = arith.constant dense<0.000000e+00> : vector<8x64xf32>
    %137 = tpu.matmul %135, %136, %cst_55 {dimension_numbers = #tpu.dot_dimension_numbers<[1], [0], [0], [1], [0, 0, 1, 1], [], []>} : vector<8x32xbf16>, vector<32x64xbf16>, vector<8x64xf32> -> vector<8x64xf32>
    %138 = vector.extract_strided_slice %137 {offsets = [0, 0], sizes = [8, 48], strides = [1, 1]} : vector<8x64xf32> to vector<8x48xf32>
    %139 = arith.mulf %138, %0 : vector<8x48xf32>
    %cst_56 = arith.constant dense<0.000000e+00> : vector<8x48xf32>
    %140 = tpu.matmul %138, %2, %cst_56 {dimension_numbers = #tpu.dot_dimension_numbers<[1], [0], [0], [1], [0, 0, 1, 1], [], []>} : vector<8x48xf32>, vector<48x48xf32>, vector<8x48xf32> -> vector<8x48xf32>
    %141 = arith.mulf %140, %1 : vector<8x48xf32>
    %142 = arith.addf %139, %141 : vector<8x48xf32>
    %143 = vector.extract_strided_slice %137 {offsets = [0, 48], sizes = [8, 16], strides = [1, 1]} : vector<8x64xf32> to vector<8x16xf32>
    %144 = vector.extract_strided_slice %142 {offsets = [0, 32], sizes = [8, 16], strides = [1, 1]} : vector<8x48xf32> to vector<8x16xf32>
    %145 = tpu.concatenate %144, %143 in 1 : vector<8x16xf32>, vector<8x16xf32> -> vector<8x32xf32>
    %146 = arith.truncf %145 : vector<8x32xf32> to vector<8x32xbf16>
    %c0_57 = arith.constant 0 : index
    %c0_58 = arith.constant 0 : index
    %c0_59 = arith.constant 0 : index
    %147 = vector.load %arg22[%c0_57, %c0_58, %c0_59] : memref<1x8x32xbf16, #tpu.memory_space<vmem>>, vector<1x8x32xbf16>
    %148 = vector.shape_cast %147 : vector<1x8x32xbf16> to vector<8x32xbf16>
    %149 = vector.shape_cast %146 : vector<8x32xbf16> to vector<1x8x32xbf16>
    tpu.vector_store %arg22[%c0_57, %c0_58, %c0_59], %149 {strides = array<i32>} : memref<1x8x32xbf16, #tpu.memory_space<vmem>>, vector<1x8x32xbf16>,
    %150 = arith.truncf %142 : vector<8x48xf32> to vector<8x48xbf16>
    %151 = arith.truncf %143 : vector<8x16xf32> to vector<8x16xbf16>
    %152 = vector.extract_strided_slice %150 {offsets = [0, 32], sizes = [8, 8], strides = [1, 1]} : vector<8x48xbf16> to vector<8x8xbf16>
    %153 = vector.extract_strided_slice %151 {offsets = [0, 0], sizes = [8, 8], strides = [1, 1]} : vector<8x16xbf16> to vector<8x8xbf16>
    %154 = vector.extract_strided_slice %150 {offsets = [0, 0], sizes = [8, 8], strides = [1, 1]} : vector<8x48xbf16> to vector<8x8xbf16>
    %155 = vector.extract_strided_slice %150 {offsets = [0, 8], sizes = [8, 8], strides = [1, 1]} : vector<8x48xbf16> to vector<8x8xbf16>
    %156 = tpu.concatenate %154, %155 in 0 : vector<8x8xbf16>, vector<8x8xbf16> -> vector<16x8xbf16>
    %cst_60 = arith.constant dense<0.000000e+00> : vector<16x8xf32>
    %157 = tpu.matmul %156, %152, %cst_60 {dimension_numbers = #tpu.dot_dimension_numbers<[1], [1], [0], [0], [0, 0, 1, 0], [], []>} : vector<16x8xbf16>, vector<8x8xbf16>, vector<16x8xf32> -> vector<16x8xf32>
    %158 = arith.addf %157, %15 : vector<16x8xf32>
    %cst_61 = arith.constant dense<0xFF800000> : vector<16xf32>
    %159 = vector.multi_reduction <maximumf>, %158, %cst_61 [1] : vector<16x8xf32> to vector<16xf32>
    %160 = vector.shape_cast %159 : vector<16xf32> to vector<16x1xf32>
    %161 = vector.broadcast %160 : vector<16x1xf32> to vector<16x8xf32>
    %162 = arith.subf %158, %161 : vector<16x8xf32>
    %163 = math.exp %162 : vector<16x8xf32>
    %cst_62 = arith.constant dense<0.000000e+00> : vector<16xf32>
    %164 = vector.multi_reduction <add>, %163, %cst_62 [1] : vector<16x8xf32> to vector<16xf32>
    %165 = vector.shape_cast %164 : vector<16xf32> to vector<16x1xf32>
    %166 = vector.broadcast %165 : vector<16x1xf32> to vector<16x8xf32>
    %167 = arith.divf %163, %166 : vector<16x8xf32>
    %168 = arith.truncf %167 : vector<16x8xf32> to vector<16x8xbf16>
    %cst_63 = arith.constant dense<0.000000e+00> : vector<16x8xf32>
    %169 = tpu.matmul %168, %153, %cst_63 {dimension_numbers = #tpu.dot_dimension_numbers<[1], [0], [0], [1], [0, 0, 1, 1], [], []>} : vector<16x8xbf16>, vector<8x8xbf16>, vector<16x8xf32> -> vector<16x8xf32>
    %170 = vector.extract_strided_slice %169 {offsets = [0, 0], sizes = [8, 8], strides = [1, 1]} : vector<16x8xf32> to vector<8x8xf32>
    %171 = vector.extract_strided_slice %169 {offsets = [8, 0], sizes = [8, 8], strides = [1, 1]} : vector<16x8xf32> to vector<8x8xf32>
    %172 = vector.extract_strided_slice %150 {offsets = [0, 40], sizes = [8, 8], strides = [1, 1]} : vector<8x48xbf16> to vector<8x8xbf16>
    %173 = vector.extract_strided_slice %151 {offsets = [0, 8], sizes = [8, 8], strides = [1, 1]} : vector<8x16xbf16> to vector<8x8xbf16>
    %174 = vector.extract_strided_slice %150 {offsets = [0, 16], sizes = [8, 8], strides = [1, 1]} : vector<8x48xbf16> to vector<8x8xbf16>
    %175 = vector.extract_strided_slice %150 {offsets = [0, 24], sizes = [8, 8], strides = [1, 1]} : vector<8x48xbf16> to vector<8x8xbf16>
    %176 = tpu.concatenate %174, %175 in 0 : vector<8x8xbf16>, vector<8x8xbf16> -> vector<16x8xbf16>
    %cst_64 = arith.constant dense<0.000000e+00> : vector<16x8xf32>
    %177 = tpu.matmul %176, %172, %cst_64 {dimension_numbers = #tpu.dot_dimension_numbers<[1], [1], [0], [0], [0, 0, 1, 0], [], []>} : vector<16x8xbf16>, vector<8x8xbf16>, vector<16x8xf32> -> vector<16x8xf32>
    %178 = arith.addf %177, %15 : vector<16x8xf32>
    %cst_65 = arith.constant dense<0xFF800000> : vector<16xf32>
    %179 = vector.multi_reduction <maximumf>, %178, %cst_65 [1] : vector<16x8xf32> to vector<16xf32>
    %180 = vector.shape_cast %179 : vector<16xf32> to vector<16x1xf32>
    %181 = vector.broadcast %180 : vector<16x1xf32> to vector<16x8xf32>
    %182 = arith.subf %178, %181 : vector<16x8xf32>
    %183 = math.exp %182 : vector<16x8xf32>
    %cst_66 = arith.constant dense<0.000000e+00> : vector<16xf32>
    %184 = vector.multi_reduction <add>, %183, %cst_66 [1] : vector<16x8xf32> to vector<16xf32>
    %185 = vector.shape_cast %184 : vector<16xf32> to vector<16x1xf32>
    %186 = vector.broadcast %185 : vector<16x1xf32> to vector<16x8xf32>
    %187 = arith.divf %183, %186 : vector<16x8xf32>
    %188 = arith.truncf %187 : vector<16x8xf32> to vector<16x8xbf16>
    %cst_67 = arith.constant dense<0.000000e+00> : vector<16x8xf32>
    %189 = tpu.matmul %188, %173, %cst_67 {dimension_numbers = #tpu.dot_dimension_numbers<[1], [0], [0], [1], [0, 0, 1, 1], [], []>} : vector<16x8xbf16>, vector<8x8xbf16>, vector<16x8xf32> -> vector<16x8xf32>
    %190 = vector.extract_strided_slice %189 {offsets = [0, 0], sizes = [8, 8], strides = [1, 1]} : vector<16x8xf32> to vector<8x8xf32>
    %191 = vector.extract_strided_slice %189 {offsets = [8, 0], sizes = [8, 8], strides = [1, 1]} : vector<16x8xf32> to vector<8x8xf32>
    %192 = tpu.concatenate %170, %171, %190, %191 in 1 : vector<8x8xf32>, vector<8x8xf32>, vector<8x8xf32>, vector<8x8xf32> -> vector<8x32xf32>
    %193 = arith.truncf %192 : vector<8x32xf32> to vector<8x32xbf16>
    %c0_68 = arith.constant 0 : index
    %c0_69 = arith.constant 0 : index
    %194 = vector.load %arg16[%c0_68, %c0_69] : memref<32x32xbf16, #tpu.memory_space<vmem>>, vector<32x32xbf16>
    %cst_70 = arith.constant dense<0.000000e+00> : vector<8x32xf32>
    %195 = tpu.matmul %193, %194, %cst_70 {dimension_numbers = #tpu.dot_dimension_numbers<[1], [0], [0], [1], [0, 0, 1, 1], [], []>} : vector<8x32xbf16>, vector<32x32xbf16>, vector<8x32xf32> -> vector<8x32xf32>
    %196 = arith.addf %121, %195 : vector<8x32xf32>
    %c0_71 = arith.constant 0 : index
    %c0_72 = arith.constant 0 : index
    %197 = vector.load %arg17[%c0_71, %c0_72] : memref<1x32xf32, #tpu.memory_space<vmem>>, vector<1x32xf32>
    %198 = arith.mulf %196, %196 : vector<8x32xf32>
    %cst_73 = arith.constant dense<0.000000e+00> : vector<8xf32>
    %199 = vector.multi_reduction <add>, %198, %cst_73 [1] : vector<8x32xf32> to vector<8xf32>
    %200 = vector.shape_cast %199 : vector<8xf32> to vector<8x1xf32>
    %cst_74 = arith.constant 3.200000e+01 : f32
    %201 = vector.broadcast %cst_74 : f32 to vector<8x1xf32>
    %202 = arith.divf %200, %201 : vector<8x1xf32>
    %cst_75 = arith.constant 9.99999997E-7 : f32
    %203 = vector.broadcast %cst_75 : f32 to vector<8x1xf32>
    %204 = arith.addf %202, %203 : vector<8x1xf32>
    %205 = math.rsqrt %204 : vector<8x1xf32>
    %206 = vector.broadcast %205 : vector<8x1xf32> to vector<8x32xf32>
    %207 = arith.mulf %196, %206 : vector<8x32xf32>
    %208 = vector.broadcast %197 : vector<1x32xf32> to vector<8x32xf32>
    %209 = arith.mulf %207, %208 : vector<8x32xf32>
    %210 = arith.truncf %209 : vector<8x32xf32> to vector<8x32xbf16>
    %c0_76 = arith.constant 0 : index
    %c0_77 = arith.constant 0 : index
    %211 = vector.load %arg18[%c0_76, %c0_77] : memref<32x128xbf16, #tpu.memory_space<vmem>>, vector<32x128xbf16>
    %cst_78 = arith.constant dense<0.000000e+00> : vector<8x128xf32>
    %212 = tpu.matmul %210, %211, %cst_78 {dimension_numbers = #tpu.dot_dimension_numbers<[1], [0], [0], [1], [0, 0, 1, 1], [], []>} : vector<8x32xbf16>, vector<32x128xbf16>, vector<8x128xf32> -> vector<8x128xf32>
    %213 = vector.extract_strided_slice %212 {offsets = [0, 0], sizes = [8, 64], strides = [1, 1]} : vector<8x128xf32> to vector<8x64xf32>
    %214 = vector.extract_strided_slice %212 {offsets = [0, 64], sizes = [8, 64], strides = [1, 1]} : vector<8x128xf32> to vector<8x64xf32>
    %215 = arith.negf %213 : vector<8x64xf32>
    %216 = math.exp %215 : vector<8x64xf32>
    %cst_79 = arith.constant 1.000000e+00 : f32
    %217 = vector.broadcast %cst_79 : f32 to vector<8x64xf32>
    %218 = arith.addf %217, %216 : vector<8x64xf32>
    %219 = arith.divf %217, %218 : vector<8x64xf32>
    %220 = arith.mulf %213, %219 : vector<8x64xf32>
    %221 = arith.mulf %220, %214 : vector<8x64xf32>
    %222 = arith.truncf %221 : vector<8x64xf32> to vector<8x64xbf16>
    %c0_80 = arith.constant 0 : index
    %c0_81 = arith.constant 0 : index
    %223 = vector.load %arg19[%c0_80, %c0_81] : memref<64x32xbf16, #tpu.memory_space<vmem>>, vector<64x32xbf16>
    %cst_82 = arith.constant dense<0.000000e+00> : vector<8x32xf32>
    %224 = tpu.matmul %222, %223, %cst_82 {dimension_numbers = #tpu.dot_dimension_numbers<[1], [0], [0], [1], [0, 0, 1, 1], [], []>} : vector<8x64xbf16>, vector<64x32xbf16>, vector<8x32xf32> -> vector<8x32xf32>
    %225 = arith.addf %196, %224 : vector<8x32xf32>
    %c0_83 = arith.constant 0 : index
    %c0_84 = arith.constant 0 : index
    %226 = vector.load %arg6[%c0_83, %c0_84] : memref<1x32xf32, #tpu.memory_space<vmem>>, vector<1x32xf32>
    %227 = arith.mulf %225, %225 : vector<8x32xf32>
    %cst_85 = arith.constant dense<0.000000e+00> : vector<8xf32>
    %228 = vector.multi_reduction <add>, %227, %cst_85 [1] : vector<8x32xf32> to vector<8xf32>
    %229 = vector.shape_cast %228 : vector<8xf32> to vector<8x1xf32>
    %cst_86 = arith.constant 3.200000e+01 : f32
    %230 = vector.broadcast %cst_86 : f32 to vector<8x1xf32>
    %231 = arith.divf %229, %230 : vector<8x1xf32>
    %cst_87 = arith.constant 9.99999997E-7 : f32
    %232 = vector.broadcast %cst_87 : f32 to vector<8x1xf32>
    %233 = arith.addf %231, %232 : vector<8x1xf32>
    %234 = math.rsqrt %233 : vector<8x1xf32>
    %235 = vector.broadcast %234 : vector<8x1xf32> to vector<8x32xf32>
    %236 = arith.mulf %225, %235 : vector<8x32xf32>
    %237 = vector.broadcast %226 : vector<1x32xf32> to vector<8x32xf32>
    %238 = arith.mulf %236, %237 : vector<8x32xf32>
    %239 = arith.truncf %238 : vector<8x32xf32> to vector<8x32xbf16>
    %c0_88 = arith.constant 0 : index
    %c0_89 = arith.constant 0 : index
    %240 = vector.load %arg7[%c0_88, %c0_89] : memref<32x128xbf16, #tpu.memory_space<vmem>>, vector<32x128xbf16>
    %cst_90 = arith.constant dense<0.000000e+00> : vector<8x128xf32>
    %241 = tpu.matmul %239, %240, %cst_90 {dimension_numbers = #tpu.dot_dimension_numbers<[1], [0], [0], [1], [0, 0, 1, 1], [], []>} : vector<8x32xbf16>, vector<32x128xbf16>, vector<8x128xf32> -> vector<8x128xf32>
    %c0_91 = arith.constant 0 : index
    %c0_92 = arith.constant 0 : index
    %c0_93 = arith.constant 0 : index
    %242 = vector.load %arg20[%c0_91, %c0_92, %c0_93] : memref<1x8x128xf32, #tpu.memory_space<vmem>>, vector<1x8x128xf32>
    %243 = vector.shape_cast %242 : vector<1x8x128xf32> to vector<8x128xf32>
    %244 = vector.shape_cast %241 : vector<8x128xf32> to vector<1x8x128xf32>
    tpu.vector_store %arg20[%c0_91, %c0_92, %c0_93], %244 {strides = array<i32>} : memref<1x8x128xf32, #tpu.memory_space<vmem>>, vector<1x8x128xf32>,
    return
  }
  func.func @transform_0(%arg0: i32) -> (i32, i32, i32) {
    %c0_i32 = arith.constant 0 : i32
    %c0_i32_0 = arith.constant 0 : i32
    %c0_i32_1 = arith.constant 0 : i32
    return %arg0, %c0_i32, %c0_i32_0 : i32, i32, i32
  }
  func.func @transform_1(%arg0: i32) -> (i32, i32, i32) {
    %c0_i32 = arith.constant 0 : i32
    %c0_i32_0 = arith.constant 0 : i32
    %c0_i32_1 = arith.constant 0 : i32
    return %arg0, %c0_i32, %c0_i32_0 : i32, i32, i32
  }
  func.func @transform_2(%arg0: i32) -> (i32, i32) {
    %c0_i32 = arith.constant 0 : i32
    %c0_i32_0 = arith.constant 0 : i32
    %c0_i32_1 = arith.constant 0 : i32
    return %c0_i32, %c0_i32_0 : i32, i32
  }
  func.func @transform_3(%arg0: i32) -> (i32, i32) {
    %c0_i32 = arith.constant 0 : i32
    %c0_i32_0 = arith.constant 0 : i32
    %c0_i32_1 = arith.constant 0 : i32
    return %c0_i32, %c0_i32_0 : i32, i32
  }
  func.func @transform_4(%arg0: i32) -> (i32, i32) {
    %c0_i32 = arith.constant 0 : i32
    %c0_i32_0 = arith.constant 0 : i32
    %c0_i32_1 = arith.constant 0 : i32
    return %c0_i32, %c0_i32_0 : i32, i32
  }
  func.func @transform_5(%arg0: i32) -> (i32, i32) {
    %c0_i32 = arith.constant 0 : i32
    %c0_i32_0 = arith.constant 0 : i32
    %c0_i32_1 = arith.constant 0 : i32
    return %c0_i32, %c0_i32_0 : i32, i32
  }
  func.func @transform_6(%arg0: i32) -> (i32, i32) {
    %c0_i32 = arith.constant 0 : i32
    %c0_i32_0 = arith.constant 0 : i32
    %c0_i32_1 = arith.constant 0 : i32
    return %c0_i32, %c0_i32_0 : i32, i32
  }
  func.func @transform_7(%arg0: i32) -> (i32, i32) {
    %c0_i32 = arith.constant 0 : i32
    %c0_i32_0 = arith.constant 0 : i32
    %c0_i32_1 = arith.constant 0 : i32
    return %c0_i32, %c0_i32_0 : i32, i32
  }
  func.func @transform_8(%arg0: i32) -> (i32, i32) {
    %c0_i32 = arith.constant 0 : i32
    %c0_i32_0 = arith.constant 0 : i32
    %c0_i32_1 = arith.constant 0 : i32
    return %c0_i32, %c0_i32_0 : i32, i32
  }
  func.func @transform_9(%arg0: i32) -> (i32, i32) {
    %c0_i32 = arith.constant 0 : i32
    %c0_i32_0 = arith.constant 0 : i32
    %c0_i32_1 = arith.constant 0 : i32
    return %c0_i32, %c0_i32_0 : i32, i32
  }
  func.func @transform_10(%arg0: i32) -> (i32, i32) {
    %c0_i32 = arith.constant 0 : i32
    %c0_i32_0 = arith.constant 0 : i32
    %c0_i32_1 = arith.constant 0 : i32
    return %c0_i32, %c0_i32_0 : i32, i32
  }
  func.func @transform_11(%arg0: i32) -> (i32, i32) {
    %c0_i32 = arith.constant 0 : i32
    %c0_i32_0 = arith.constant 0 : i32
    %c0_i32_1 = arith.constant 0 : i32
    return %c0_i32, %c0_i32_0 : i32, i32
  }
  func.func @transform_12(%arg0: i32) -> (i32, i32) {
    %c0_i32 = arith.constant 0 : i32
    %c0_i32_0 = arith.constant 0 : i32
    %c0_i32_1 = arith.constant 0 : i32
    return %c0_i32, %c0_i32_0 : i32, i32
  }
  func.func @transform_13(%arg0: i32) -> (i32, i32) {
    %c0_i32 = arith.constant 0 : i32
    %c0_i32_0 = arith.constant 0 : i32
    %c0_i32_1 = arith.constant 0 : i32
    return %c0_i32, %c0_i32_0 : i32, i32
  }
  func.func @transform_14(%arg0: i32) -> (i32, i32) {
    %c0_i32 = arith.constant 0 : i32
    %c0_i32_0 = arith.constant 0 : i32
    %c0_i32_1 = arith.constant 0 : i32
    return %c0_i32, %c0_i32_0 : i32, i32
  }
  func.func @transform_15(%arg0: i32) -> (i32, i32) {
    %c0_i32 = arith.constant 0 : i32
    %c0_i32_0 = arith.constant 0 : i32
    %c0_i32_1 = arith.constant 0 : i32
    return %c0_i32, %c0_i32_0 : i32, i32
  }
  func.func @transform_16(%arg0: i32) -> (i32, i32) {
    %c0_i32 = arith.constant 0 : i32
    %c0_i32_0 = arith.constant 0 : i32
    %c0_i32_1 = arith.constant 0 : i32
    return %c0_i32, %c0_i32_0 : i32, i32
  }
  func.func @transform_17(%arg0: i32) -> (i32, i32) {
    %c0_i32 = arith.constant 0 : i32
    %c0_i32_0 = arith.constant 0 : i32
    %c0_i32_1 = arith.constant 0 : i32
    return %c0_i32, %c0_i32_0 : i32, i32
  }
  func.func @transform_18(%arg0: i32) -> (i32, i32) {
    %c0_i32 = arith.constant 0 : i32
    %c0_i32_0 = arith.constant 0 : i32
    %c0_i32_1 = arith.constant 0 : i32
    return %c0_i32, %c0_i32_0 : i32, i32
  }
  func.func @transform_19(%arg0: i32) -> (i32, i32, i32) {
    %c0_i32 = arith.constant 0 : i32
    %c0_i32_0 = arith.constant 0 : i32
    %c0_i32_1 = arith.constant 0 : i32
    return %arg0, %c0_i32, %c0_i32_0 : i32, i32, i32
  }
  func.func @transform_20(%arg0: i32) -> (i32, i32, i32) {
    %c0_i32 = arith.constant 0 : i32
    %c0_i32_0 = arith.constant 0 : i32
    %c0_i32_1 = arith.constant 0 : i32
    return %arg0, %c0_i32, %c0_i32_0 : i32, i32, i32
  }
  func.func @transform_21(%arg0: i32) -> (i32, i32, i32) {
    %c0_i32 = arith.constant 0 : i32
    %c0_i32_0 = arith.constant 0 : i32
    %c0_i32_1 = arith.constant 0 : i32
    return %arg0, %c0_i32, %c0_i32_0 : i32, i32, i32
  }
}

</mosaic_0001>

<bundles_post_ra>
// kernel: tile.14
= control target key start
LH: loop header
LB: loop body
LE: loop exit
PB: predicated region body
PF: predicated region fallthrough
CT: control target
= control target key end

     0   :  { %vm4_vm0 = vcmask 1047556   ;;  %s73_s14 = smov 40   ;;  %s74_s19 = smov 24   ;;  %vm6_vm1 = vcmask 64512   ;;  %vm16_vm2 = vcmask 392512   ;;  %vm26_vm3 = vcmask 326912   ;;  %s148_s0 = inlined_call_operand.vmem [shape: f32[8,6,8], index: 0, kind: input, shape index: {}]   ;;  %s149_s1 = inlined_call_operand.vmem [shape: f32[8,48], index: 1, kind: output, shape index: {}]  }
   0x1   :  { %v58_v0 = vld [vmem:[%s148_s0 + $0x5] ss:$8 sm:$0xf]   ;;  %v62_v3 = vld [vmem:[%s148_s0 + $0x3] ss:$8 sm:$0xf]  }
   0x2   :  { %v59_v1 = vld [vmem:[%s148_s0 + $0x5] ss:$8 sm:$0xf0]   ;;  %v63_v4 = vld [vmem:[%s148_s0 + $0x3] ss:$8 sm:$0xf0]  }
   0x3   :  { %v13_v2 = vsel %vm4_vm0, %v59_v1, %v58_v0  ;;  %v33_v5 = vsel %vm4_vm0, %v63_v4, %v62_v3  ;;  %v60_v6 = vld [vmem:[%s148_s0 + $0x4] ss:$8 sm:$0xf]   ;;  %v64_v9 = vld [vmem:[%s148_s0 + $0x2] ss:$8 sm:$0xf]  }
   0x4   :  { %14 = vrot.lane.b32.xlu0 %v13_v2, %s73_s14  ;;  %v61_v7 = vld [vmem:[%s148_s0 + $0x4] ss:$8 sm:$0xf0]   ;;  %34 = vrot.lane.b32.xlu1 %v33_v5, %s74_s19  ;;  %v65_v10 = vld [vmem:[%s148_s0 + $0x2] ss:$8 sm:$0xf0]  }
   0x5   :  { %v23_v8 = vsel %vm4_vm0, %v61_v7, %v60_v6  ;;  %v66_v11 = vld [vmem:[%s148_s0 + $0x1] ss:$8 sm:$0xf]   ;;  %v43_v12 = vsel %vm4_vm0, %v65_v10, %v64_v9  ;;  %s75_s28 = smov 32   ;;  %s77_s6 = smov 8   ;;  %vm36_vm4 = vcmask 261312  }
   0x6   :  { %v67_v13 = vld [vmem:[%s148_s0 + $0x1] ss:$8 sm:$0xf0]   ;;  %v2_v14 = vld [vmem:[%s148_s0] ss:$8 sm:$0xf]  }
   0x7   :  { %v3_v15 = vld [vmem:[%s148_s0] ss:$8 sm:$0xf0]   ;;  %s76_s0 = smov 16   ;;  %v53_v16 = vsel %vm4_vm0, %v67_v13, %v66_v11  ;;  %vm46_vm5 = vcmask 195712   ;;  %vm56_vm6 = vcmask 130112  }
   0x8   :  { %24 = vrot.lane.b32.xlu0 %v23_v8, %s75_s28  ;;  %44 = vrot.lane.b32.xlu1 %v43_v12, %s76_s0  ;;  %v5_v17 = vsel %vm4_vm0, %v3_v15, %v2_v14 }
   0x9   :  { %7 = vst.msk [vmem:[%s149_s1] sm:$0xff] %vm6_vm1, %v5_v17  }
   0xc   :  { %54 = vrot.lane.b32.xlu0 %v53_v16, %s77_s6 }
  0x76   :  { %v15_v18 = vpop.permute.xlu0 %14   ;;  %v35_v19 = vpop.permute.xlu1 %34  }
  0x77   :  { %17 = vst.msk [vmem:[%s149_s1] sm:$0xff] %vm16_vm2, %v15_v18  }
  0x7a   :  { %v25_v20 = vpop.permute.xlu0 %24   ;;  %v45_v21 = vpop.permute.xlu1 %44  }
  0x7b   :  { %27 = vst.msk [vmem:[%s149_s1] sm:$0xff] %vm26_vm3, %v25_v20  }
  0x7c   :  { %37 = vst.msk [vmem:[%s149_s1] sm:$0xff] %vm36_vm4, %v35_v19  }
  0x7d   :  { %47 = vst.msk [vmem:[%s149_s1] sm:$0xff] %vm46_vm5, %v45_v21  }
  0x7e   :  { %v55_v22 = vpop.permute.xlu0 %54  }
  0x7f   :  { %57 = vst.msk [vmem:[%s149_s1] sm:$0xff] %vm56_vm6, %v55_v22  }

// kernel: llama_wrapper_forward.1
= control target key start
LH: loop header
LB: loop body
LE: loop exit
PB: predicated region body
PF: predicated region fallthrough
CT: control target
= control target key end

     0   :  { %s3330_s0 = inlined_call_operand.vmem [shape: f32[2,8,32], index: 0, kind: input, shape index: {}]   ;;  %s3331_s1 = inlined_call_operand.vmem [shape: f32[2,1,8], index: 1, kind: input, shape index: {}]   ;;  %s3332_s2 = inlined_call_operand.vmem [shape: f32[8,48], index: 2, kind: input, shape index: {}]   ;;  %s3333_s3 = inlined_call_operand.vmem [shape: f32[8,48], index: 3, kind: input, shape index: {}]   ;;  %s3334_s4 = inlined_call_operand.vmem [shape: f32[48,48], index: 4, kind: input, shape index: {}]   ;;  %s3335_s5 = inlined_call_operand.vmem [shape: f32[1,32], index: 5, kind: input, shape index: {}]   ;;  %s3336_s6 = inlined_call_operand.vmem [shape: bf16[32,128], index: 6, kind: input, shape index: {}]   ;;  %s3337_s7 = inlined_call_operand.vmem [shape: f32[1,32], index: 7, kind: input, shape index: {}]   ;;  %s3338_s8 = inlined_call_operand.vmem [shape: bf16[32,64], index: 8, kind: input, shape index: {}]   ;;  %s3339_s9 = inlined_call_operand.vmem [shape: bf16[32,32], index: 9, kind: input, shape index: {}]   ;;  %s3340_s10 = inlined_call_operand.vmem [shape: f32[1,32], index: 10, kind: input, shape index: {}]   ;;  %s3341_s11 = inlined_call_operand.vmem [shape: bf16[32,128], index: 11, kind: input, shape index: {}]   ;;  %s3342_s12 = inlined_call_operand.vmem [shape: bf16[64,32], index: 12, kind: input, shape index: {}]   ;;  %s3343_s13 = inlined_call_operand.vmem [shape: f32[1,32], index: 13, kind: input, shape index: {}]   ;;  %s3344_s14 = inlined_call_operand.vmem [shape: bf16[32,64], index: 14, kind: input, shape index: {}]   ;;  %s3345_s15 = inlined_call_operand.vmem [shape: bf16[32,32], index: 15, kind: input, shape index: {}]   ;;  %s3346_s16 = inlined_call_operand.vmem [shape: f32[1,32], index: 16, kind: input, shape index: {}]   ;;  %s3347_s17 = inlined_call_operand.vmem [shape: bf16[32,128], index: 17, kind: input, shape index: {}]   ;;  %s3348_s18 = inlined_call_operand.vmem [shape: bf16[64,32], index: 18, kind: input, shape index: {}]   ;;  %s3349_s19 = inlined_call_operand.hbm [shape: f32[2,8,128], index: 19, kind: output, shape index: {0}]   ;;  %s3350_s20 = inlined_call_operand.vmem [shape: bf16[2,8,32], index: 20, kind: output, shape index: {1}]   ;;  %s3351_s21 = inlined_call_operand.vmem [shape: bf16[2,8,32], index: 21, kind: output, shape index: {2}]  }
   0x1   :  { %3367 = sst [smem:[#allocation9_spill]] %s3330_s0 }
   0x2   :  { %3368 = sst [smem:[#allocation10_spill]] %s3331_s1 }
   0x3   :  { %3369 = sst [smem:[#allocation11_spill]] %s3332_s2 }
   0x4   :  { %3370 = sst [smem:[#allocation12_spill]] %s3333_s3 }
   0x5   :  { %3371 = sst [smem:[#allocation13_spill]] %s3334_s4 }
   0x6   :  { %3372 = sst [smem:[#allocation14_spill]] %s3335_s5 }
   0x7   :  { %3373 = sst [smem:[#allocation15_spill]] %s3336_s6 }
   0x8   :  { %3374 = sst [smem:[#allocation16_spill]] %s3337_s7 }
   0x9   :  { %27 = vsyncpa [#allocation3], 0 }
   0xa   :  { %29 = vsyncpa [#allocation3 + $0x1], 0  ;;  %s2879_s2 = smov 0   ;;  %s2881_s25 = smov 0  }
   0xb   :  { %s2883_s26 = smov 0   ;;  %s2885_s27 = smov 0  }
   0xc LB: > { %3375 = sst [smem:[#allocation5_spill]] %s2747_s26  ;;  %s2900_s3 = sadd.s32 4294967295, %s2751_s27   ;;  %s2751_s27 = sphi %s2885_s27, %s3400_s27   ;;  %s2747_s26 = sphi %s2883_s26, %s3402_s26   ;;  %s2743_s25 = sphi %s2881_s25, %s3404_s25   ;;  %s2739_s2 = sphi %s2879_s2, %s3403_s2  }
   0xd   : > { %s2256_s28 = sadd.s32 4294967294, %s2751_s27   ;;  %s2904_s29 = sadd.s32 1, %s2751_s27  }
   0xe   : > { %3376 = sst [smem:[#allocation6_spill]] %s2904_s29  ;;  %s451_s0 = sadd.s32 1, %s2747_s26 }
   0xf   : > { %s448_s4 = ssub.s32 %s2751_s27, %s2904_s29  ;;  %p461_p0 = scmp.ne.s32.totalorder %s2747_s26, %s2743_s25 }
  0x10   : > { %p449_p1 = scmp.eq.s32.totalorder %s448_s4, 0  ;;  %p462_p2 = scmp.eq.s32.totalorder %s2900_s3, 1 }
  0x11   : > { %p467_p3 = scmp.ne.s32.totalorder %s2743_s25, %s2739_s2  ;;  %p468_p4 = scmp.eq.s32.totalorder %s2256_s28, 1 }
  0x12   : > { %s2915_s30 = scalar_select %p449_p1, %s2747_s26, %s451_s0  }
  0x13   : > { %p2917_p5 = por %p462_p2, %p461_p0  ;;  %p2921_p6 = por %p468_p4, %p467_p3 }
  0x14   : > { %3377 = sst [smem:[#allocation7_spill]] %s2915_s30  ;;  %p2259_p7 = scmp.ge.s32.totalorder %s2751_s27, 1 }
  0x15   : > { %s3379_s22 = scalar_select %p2921_p6, 1, 0 }
  0x16   : > { %p602_p8 = scmp.lt.s32.totalorder %s2751_s27, 3 }
  0x17   : > { %3380 = sst [smem:[#allocation8_spill]] %s3379_s22 }
  0x18   : > { %p603_p9 = pnand %p2259_p7, %p602_p8 }
  0x19   : > { %p672_p10 = scmp.lt.s32.totalorder (!%p603_p9), %s2900_s3, 1  ;;  %s3381_s0 = sld [smem:[#allocation9_spill]] (!%p603_p9)  ;;  %vm714_vm0 = vcmask (!%p603_p9), 261120   ;;  %v2617_v3 = vld [vmem:[%s3338_s8] sm:$0xff] (!%p603_p9)   ;;  %v2753_v4 = vmov (!%p603_p9), 0.0   ;;  %vm2754_vm1 = vmmov (!%p603_p9), 0   ;;  %v696_v45 = vlaneseq (!%p603_p9) }
  0x1a   : > { %606 = sbr.rel (%p603_p9) target bundleno = 5671 (0x1627), region = 96  ;;  %2377 = vmatprep.subr.bf16.mxu0 (!%p603_p9), %v2753_v4  ;;  %2381 = vmatprep.mubr.msk.bf16.mxu0 (!%p603_p9), %vm2754_vm1, %v2753_v4  ;;  %v2618_v5 = vld [vmem:[%s3338_s8 + $0x8] sm:$0xff] (!%p603_p9)   ;;  %s3382_s28 = sld [smem:[#allocation13_spill]] (!%p603_p9)  ;;  %v2755_v9 = vmov (!%p603_p9), 0.0|0.0   ;;  %vm791_vm2 = vcmask (!%p603_p9), 392192   ;;  %vm891_vm3 = vcmask (!%p603_p9), 64512  }
  0x1b   : > { %2378 = vmatpush3.bf16.msra.mxu0 (!%p603_p9), %v2617_v3  ;;  %2397 = vmatprep.mubr.msk.f32.mxu1 (!%p603_p9), %vm2754_vm1, %v2753_v4  ;;  %s3383_s7 = sld [smem:[#allocation16_spill]] (!%p603_p9)  ;;  %s3384_s26 = sld [smem:[#allocation11_spill]] (!%p603_p9)  ;;  %vm885_vm4 = vcmask (!%p603_p9), 1043456   ;;  %v697_v47 = vshrl.u32 (!%p603_p9), %v696_v45, 7  ;;  %v2760_v49 = vmov (!%p603_p9), 0   ;;  %v699_v52 = vand.u32 (!%p603_p9), 127, %v696_v45 }
  0x1c   : > { %2379 = vmatprep.subr.bf16.mxu0 (!%p603_p9), %v2753_v4  ;;  %2535 = vmatprep.subr.bf16.mxu1 (!%p603_p9), %v2755_v9  ;;  %s3385_s22 = sld [smem:[#allocation12_spill]] (!%p603_p9)  ;;  %s3359_s24 = smov (!%p603_p9), 112   ;;  %v2761_v53 = vmov (!%p603_p9), -1e+30   ;;  %vm874_vm9 = vcmask (!%p603_p9), 130048   ;;  %vm1149_vm10 = vcmask (!%p603_p9), 195584  }
  0x1d   : > { %s3386_s29 = sld [smem:[#allocation10_spill]] (!%p603_p9)  ;;  %v706_v48 = vsub.s32 (!%p603_p9), 0, %v697_v47  ;;  %vm700_vm7 = vcmp.le.s32.totalorder (!%p603_p9), %v699_v52, %v697_v47  ;;  %s3357_s30 = smov (!%p603_p9), 72   ;;  %vm1333_vm11 = vcmask (!%p603_p9), 523264   ;;  %vm877_vm12 = vcmask (!%p603_p9), 257024  }
  0x1e   : > { %s3396_s6 = sld [smem:[#allocation15_spill]] (!%p603_p9) }
  0x1f   : > { %2380 = vmatpush3.bf16.msra.mxu0 (!%p603_p9), %v2618_v5 }
  0x20   : > { %2400 = vmatprep.subr.bf16.mxu0 (!%p603_p9), %v2753_v4  ;;  %v690_v6 = vld [vmem:[%s3382_s28] sm:$0xff] (!%p603_p9)  ;;  %v691_v7 = vld [vmem:[%s3382_s28 + $0x8] sm:$0xff] (!%p603_p9)  ;;  %v692_v8 = vld [vmem:[%s3382_s28 + $0x10] sm:$0xff] (!%p603_p9) }
  0x21   : > { %s2929_s23 = scalar_select %p672_p10, %s2900_s3, 1  ;;  %v2963_v10 = vpack.c.bf16 %v691_v7, %v690_v6  ;;  %v693_v11 = vld [vmem:[%s3382_s28 + $0x18] sm:$0xff]  ;;  %v694_v13 = vld [vmem:[%s3382_s28 + $0x20] sm:$0xff]  ;;  %v695_v14 = vld [vmem:[%s3382_s28 + $0x28] sm:$0xff] }
  0x22   : > { %v2969_v12 = vpack.c.bf16 %v693_v11, %v692_v8  ;;  %v2979_v15 = vpack.c.bf16 %v695_v14, %v694_v13  ;;  %v2264_v20 = vld [vmem:[%s3383_s7] ss:$0 sm:$0xff] }
  0x23   : > { %s2261_s1 = sshll.u32 %s2929_s23, 3  ;;  %2537 = vmatpush3.bf16.msra.mxu1 %v2963_v10  ;;  %v3000_v28 = vld [vmem:[%s3384_s26] sm:$0xff]  ;;  %s3358_s26 = smov 80  }
  0x24   : > { %s675_s4 = scalar_lea.vmem %s3381_s0, %s2261_s1  ;;  %2538 = vmatprep.subr.bf16.mxu1 %v2755_v9  ;;  %v3005_v29 = vld [vmem:[%s3385_s22] sm:$0xff]  ;;  %s3366_s0 = smov 96  }
  0x25   : > { %v2935_v0 = vld [vmem:[%s675_s4] sm:$0xff]  ;;  %s3364_s4 = smov 120   ;;  %s3363_s1 = smov 88  }
  0x26   : > { %v713_v1 = vmul.f32 %v2935_v0, %v2935_v0  ;;  %s678_s22 = scalar_lea.vmem %s3386_s29, %s2929_s23  ;;  %s3361_s29 = smov 16  }
  0x27   : > { %2540 = vmatpush3.bf16.msra.mxu1 %v2969_v12  ;;  %v701_v46 = vld [vmem:[%s678_s22] sm:$0x1]  ;;  %s3360_s22 = smov 24  }
  0x28   : > { %v715_v2 = vsel %vm714_vm0, %v713_v1, 0.0  ;;  %2541 = vmatprep.subr.bf16.mxu1 %v2755_v9  ;;  %vm702_vm5 = vcmp.gt.f32.partialorder %v701_v46, 0.5 }
  0x29   : > { %716 = vadd.xlane.f32.xlu0 %v715_v2  ;;  %v703_v50 = vsel %vm702_vm5, 1, %v2760_v49 }
  0x2a   : > { %v707_v51 = vrot.slane %v703_v50, %v706_v48 }
  0x2b   : > { %2543 = vmatpush3.bf16.msra.mxu1 %v2979_v15 }
  0x2c   : > { %2406 = vmatprep.subr.bf16.mxu1 %v2753_v4  ;;  %vm708_vm6 = vcmp.eq.s32.totalorder %v707_v51, 1 }
  0x2d   : > { %vm709_vm8 = vmand %vm700_vm7, %vm708_vm6 }
  0x2e   : > { %v3035_v54 = vsel %vm709_vm8, 0.0, %v2761_v53 }
  0xb6   : > { %v717_v16 = vpop.xlane.xlu0 %716 }
  0xb7   : > { %v719_v17 = vmul.f32 0.03125, %v717_v16 }
  0xb9   : > { %v720_v18 = vadd.f32 1e-06, %v719_v17 }
  0xbb   : > { %2639 = vrsqrt.f32 %v720_v18 }
  0xc5   : > { %v2640_v19 = vpop.eup %2639 }
  0xc6   : > { %v722_v21 = vmul.f32 %v2640_v19, %v2935_v0 }
  0xc8   : > { %v729_v22 = vmul.f32 %v2264_v20, %v722_v21 }
  0xca   : > { %v730_v23 = vpack.c.bf16 %v729_v22, %v729_v22 }
  0xcc   : > { %2382 = vmatmul.mubr.msk.bf16.vlgmr.msra.gmra.mrb[0].mxu0 %vm714_vm0, %v730_v23 }
  0xcd   : > { %2402 = vmatprep.mubr.msk.bf16.mxu0 %vm2754_vm1, %v2753_v4 }
 0x19f   : > { %v2991_v24 = vpop.f32.mrb[0].mxu0 }
 0x1a0   : > { %v2383_v25 = vpop.f32.mrb[1].mxu0  ;;  %2398 = vmatmul.mubr.msk.f32.vlgmr.msra.gmra.mrb[0].mxu1 %vm791_vm2, %v2991_v24  ;;  %v790_v31 = vmul.f32 %v2991_v24, %v3000_v28 }
 0x1a1   : > { %v787_v26 = vpop.f32.mrb[2].mxu0  ;;  %2408 = vmatprep.mubr.msk.bf16.mxu1 %vm2754_vm1, %v2753_v4 }
 0x1a2   : > { %v2384_v27 = vpop.f32.mrb[3].mxu0 }
 0x273   : > { %v861_v30 = vpop.f32.mrb[0].mxu1 }
 0x274   : > { %v865_v32 = vmul.f32 %v861_v30, %v3005_v29  ;;  %v2399_v33 = vpop.f32.mrb[1].mxu1 }
 0x276   : > { %v3010_v34 = vadd.f32 %v865_v32, %v790_v31 }
 0x278   : > { %v879_v35 = vpack.c.bf16 %v3010_v34, %v3010_v34  ;;  %v2607_v36 = vpack.i.bf16 %v2991_v24, %v3010_v34 }
 0x27a   : > { %889 = vrot.lane.b32.xlu1 %v879_v35, %s3366_s0  ;;  %v882_v37 = vrot.slane %v879_v35, 4 }
 0x27c   : > { %883 = vrot.lane.b32.xlu0 %v882_v37, %s3364_s4  ;;  %s3387_s4 = smov 120  }
 0x27e   : > { %1014 = vrot.lane.b32.xlu1 %v879_v35, %s3363_s1  ;;  %s3390_s1 = smov 80  }
 0x2ec   : > { %v890_v38 = vpop.permute.xlu1 %889 }
 0x2ed   : > { %v895_v39 = vsel %vm891_vm3, %v890_v38, 0  ;;  %v880_v38 = vpack.c.bf16 %v2991_v24, %v2991_v24 }
 0x2ee   : > { %2401 = vmatpush3.bf16.xpose.msra.mxu0 %v895_v39  ;;  %v884_v40 = vpop.permute.xlu0 %883 }
 0x2ef   : > { %v888_v41 = vsel %vm885_vm4, %v879_v35, %v884_v40  ;;  %2412 = vmatprep.subr.bf16.mxu0 %v2753_v4 }
 0x2f0   : > { %1012 = vrot.lane.b32.xlu1 %v888_v41, %s3359_s24  ;;  %v1015_v42 = vpop.permute.xlu1 %1014  ;;  %s3362_s24 = smov 8  }
 0x2f1   : > { %v1020_v43 = vsel %vm891_vm3, %v1015_v42, 0 }
 0x2f5   : > { %2403 = vmatmul.mubr.msk.bf16.vlgmr.msra.gmra.mrb[4].mxu0 %vm891_vm3, %v888_v41 }
 0x2f6   : > { %2413 = vmatpush3.bf16.xpose.msra.mxu0 %v1020_v43  ;;  %2414 = vmatprep.mubr.msk.bf16.mxu0 %vm2754_vm1, %v2753_v4 }
 0x2f7   : > { %2424 = vmatprep.subr.bf16.mxu0 %v2753_v4 }
 0x362   : > { %v1013_v44 = vpop.permute.xlu1 %1012 }
 0x363   : > { %2415 = vmatmul.mubr.msk.bf16.vlgmr.msra.gmra.mrb[8].mxu0 %vm891_vm3, %v1013_v44 }
 0x364   : > { %2428 = vmatprep.mubr.msk.bf16.mxu0 %vm2754_vm1, %v2753_v4 }
 0x3c8   : > { %v931_v55 = vpop.f32.mrb[4].mxu0 }
 0x3c9   : > { %v932_v56 = vadd.f32 %v931_v55, %v3035_v54  ;;  %v2404_v57 = vpop.f32.mrb[5].mxu0 }
 0x3ca   : > { %v934_v58 = vpop.f32.mrb[6].mxu0 }
 0x3cb   : > { %v935_v59 = vadd.f32 %v934_v58, %v3035_v54  ;;  %v2405_v60 = vpop.f32.mrb[7].mxu0  ;;  %v938_v61 = vsel %vm891_vm3, %v932_v56, -inf  ;;  %v2619_v58 = vld [vmem:[%s3339_s9] sm:$0xff]  }
 0x3cc   : > { %939 = vmax.xlane.f32.xlu1 %v938_v61  ;;  %2425 = vmatpush3.bf16.msra.mxu0 %v2619_v58 }
 0x3cd   : > { %v941_v62 = vsel %vm891_vm3, %v935_v59, -inf  ;;  %2426 = vmatprep.subr.bf16.mxu0 %v2753_v4 }
 0x3ce   : > { %942 = vmax.xlane.f32.xlu0 %v941_v62 }
 0x436   : > { %v1056_v63 = vpop.f32.mrb[8].mxu0 }
 0x437   : > { %v1057_v1 = vadd.f32 %v1056_v63, %v3035_v54  ;;  %v2416_v2 = vpop.f32.mrb[9].mxu0 }
 0x438   : > { %v1059_v3 = vpop.f32.mrb[10].mxu0 }
 0x439   : > { %v1060_v5 = vadd.f32 %v1059_v3, %v3035_v54  ;;  %v2417_v6 = vpop.f32.mrb[11].mxu0  ;;  %v1063_v7 = vsel %vm891_vm3, %v1057_v1, -inf }
 0x43a   : > { %1064 = vmax.xlane.f32.xlu1 %v1063_v7 }
 0x43b   : > { %v1066_v8 = vsel %vm891_vm3, %v1060_v5, -inf }
 0x43e   : > { %1067 = vmax.xlane.f32.xlu1 %v1066_v8 }
 0x459   : > { %v940_v11 = vpop.xlane.xlu1 %939 }
 0x45a   : > { %v944_v13 = vsub.f32 %v932_v56, %v940_v11 }
 0x45b   : > { %v943_v14 = vpop.xlane.xlu0 %942 }
 0x45c   : > { %v946_v16 = vmul.f32 1.442695, %v944_v13  ;;  %v945_v17 = vsub.f32 %v935_v59, %v943_v14  ;;  %v2620_v59 = vld [vmem:[%s3339_s9 + $0x8] sm:$0xff]  }
 0x45d   : > { %2427 = vmatpush3.bf16.msra.mxu0 %v2620_v59 }
 0x45e   : > { %2641 = vpow2.f32 %v946_v16  ;;  %v948_v18 = vmul.f32 1.442695, %v945_v17  ;;  %2440 = vmatprep.subr.bf16.mxu0 %v2753_v4 }
 0x460   : > { %2643 = vpow2.f32 %v948_v18 }
 0x468   : > { %v2642_v19 = vpop.eup %2641 }
 0x469   : > { %v950_v20 = vsel %vm891_vm3, %v2642_v19, 0.0 }
 0x46a   : > { %v2644_v21 = vpop.eup %2643  ;;  %951 = vadd.xlane.f32.xlu1 %v950_v20 }
 0x46b   : > { %v953_v22 = vsel %vm891_vm3, %v2644_v21, 0.0 }
 0x46c   : > { %954 = vadd.xlane.f32.xlu0 %v953_v22 }
 0x4c7   : > { %v1065_v23 = vpop.xlane.xlu1 %1064 }
 0x4c8   : > { %v1069_v25 = vsub.f32 %v1057_v1, %v1065_v23 }
 0x4ca   : > { %v1071_v26 = vmul.f32 1.442695, %v1069_v25  ;;  %v2621_v25 = vld [vmem:[%s3341_s11] sm:$0xff]  }
 0x4cb   : > { %v1068_v27 = vpop.xlane.xlu1 %1067 }
 0x4cc   : > { %2645 = vpow2.f32 %v1071_v26  ;;  %v1070_v30 = vsub.f32 %v1060_v5, %v1068_v27  ;;  %v2622_v26 = vld [vmem:[%s3341_s11 + $0x8] sm:$0xff]  }
 0x4ce   : > { %v1073_v31 = vmul.f32 1.442695, %v1070_v30 }
 0x4d0   : > { %2647 = vpow2.f32 %v1073_v31 }
 0x4d6   : > { %v2646_v32 = vpop.eup %2645 }
 0x4d7   : > { %v1075_v33 = vsel %vm891_vm3, %v2646_v32, 0.0 }
 0x4d8   : > { %1076 = vadd.xlane.f32.xlu1 %v1075_v33 }
 0x4da   : > { %v2648_v35 = vpop.eup %2647 }
 0x4db   : > { %v1078_v37 = vsel %vm891_vm3, %v2648_v35, 0.0 }
 0x4dc   : > { %1079 = vadd.xlane.f32.xlu0 %v1078_v37 }
 0x4e9   : > { %962 = vrot.lane.b32.xlu1 %v880_v38, %s3358_s26  ;;  %s3388_s26 = smov 88  }
 0x4f2   : > { %1086 = vrot.lane.b32.xlu0 %v880_v38, %s3357_s30  ;;  %v2623_v38 = vld [vmem:[%s3342_s12] sm:$0xff]   ;;  %s3389_s30 = smov 112  }
 0x4f7   : > { %v952_v40 = vpop.xlane.xlu1 %951 }
 0x4f9   : > { %v955_v39 = vpop.xlane.xlu0 %954 }
 0x4fa   : > { %2649 = vrcp.f32 %v955_v39  ;;  %v2624_v39 = vld [vmem:[%s3342_s12 + $0x8] sm:$0xff]  }
 0x4fb   : > { %2651 = vrcp.f32 %v952_v40  ;;  %v2625_v40 = vld [vmem:[%s3342_s12 + $0x10] sm:$0xff]  }
 0x504   : > { %v2650_v41 = vpop.eup %2649 }
 0x505   : > { %v2652_v43 = vpop.eup %2651  ;;  %v959_v44 = vmul.f32 %v2650_v41, %v2644_v21  ;;  %v2626_v41 = vld [vmem:[%s3342_s12 + $0x18] sm:$0xff]  }
 0x506   : > { %v957_v47 = vmul.f32 %v2652_v43, %v2642_v19 }
 0x508   : > { %v960_v49 = vpack.c.bf16 %v959_v44, %v957_v47 }
 0x565   : > { %v1077_v42 = vpop.xlane.xlu1 %1076 }
 0x566   : > { %2653 = vrcp.f32 %v1077_v42 }
 0x569   : > { %v1080_v45 = vpop.xlane.xlu0 %1079  ;;  %v963_v46 = vpop.permute.xlu1 %962 }
 0x56a   : > { %2655 = vrcp.f32 %v1080_v45  ;;  %v968_v48 = vsel %vm885_vm4, %v963_v46, 0 }
 0x56b   : > { %2407 = vmatpush3.bf16.msra.mxu1 %v968_v48 }
 0x56c   : > { %2418 = vmatprep.subr.bf16.mxu1 %v2753_v4 }
 0x56d   : > { %v1087_v50 = vpop.permute.xlu0 %1086 }
 0x56e   : > { %v1092_v51 = vsel %vm885_vm4, %v1087_v50, 0  ;;  %2409 = vmatmul.mubr.msk.bf16.vlgmr.msra.gmra.mrb[4].mxu1 %vm891_vm3, %v960_v49 }
 0x56f   : > { %2419 = vmatpush3.bf16.msra.mxu1 %v1092_v51  ;;  %2420 = vmatprep.mubr.msk.bf16.mxu1 %vm2754_vm1, %v2753_v4 }
 0x570   : > { %2432 = vmatprep.subr.bf16.mxu1 %v2753_v4  ;;  %v2654_v52 = vpop.eup %2653 }
 0x571   : > { %v1082_v55 = vmul.f32 %v2654_v52, %v2646_v32  ;;  %v2276_v32 = vld [vmem:[%s3340_s10] ss:$0 sm:$0xff] }
 0x574   : > { %v2656_v53 = vpop.eup %2655 }
 0x575   : > { %v1084_v56 = vmul.f32 %v2656_v53, %v2648_v35 }
 0x577   : > { %v1085_v57 = vpack.c.bf16 %v1084_v56, %v1082_v55 }
 0x579   : > { %2421 = vmatmul.mubr.msk.bf16.vlgmr.msra.gmra.mrb[8].mxu1 %vm891_vm3, %v1085_v57 }
 0x57a   : > { %2436 = vmatprep.mubr.msk.bf16.mxu1 %vm2754_vm1, %v2753_v4  ;;  %2433 = vmatpush3.bf16.msra.mxu1 %v2621_v25 }
 0x57b   : > { %2434 = vmatprep.subr.bf16.mxu1 %v2753_v4 }
 0x57e   : > { %2435 = vmatpush3.bf16.msra.mxu1 %v2622_v26 }
 0x57f   : > { %2452 = vmatprep.subr.bf16.mxu1 %v2753_v4 }
 0x641   : > { %v1004_v60 = vpop.f32.mrb[4].mxu1 }
 0x642   : > { %v2410_v61 = vpop.f32.mrb[5].mxu1 }
 0x643   : > { %v1007_v62 = vpop.f32.mrb[6].mxu1 }
 0x644   : > { %1136 = vrot.lane.b32.xlu1 %v1007_v62, %s3362_s24  ;;  %v2411_v63 = vpop.f32.mrb[7].mxu1  ;;  %v2627_v62 = vld [vmem:[%s3344_s14] sm:$0xff]   ;;  %s3391_s24 = smov 72  }
 0x645   : > { %v2628_v63 = vld [vmem:[%s3344_s14 + $0x8] sm:$0xff]  }
 0x64c   : > { %v1128_v1 = vpop.f32.mrb[8].mxu1 }
 0x64d   : > { %1140 = vrot.lane.b32.xlu1 %v1128_v1, %s3361_s29  ;;  %v2422_v2 = vpop.f32.mrb[9].mxu1  ;;  %s3394_s29 = smov 24  }
 0x64e   : > { %v1131_v3 = vpop.f32.mrb[10].mxu1 }
 0x64f   : > { %1144 = vrot.lane.b32.xlu0 %v1131_v3, %s3360_s22  ;;  %v2423_v5 = vpop.f32.mrb[11].mxu1  ;;  %s2767_s22 = smov 64  }
 0x6b6   : > { %v1137_v6 = vpop.permute.xlu1 %1136 }
 0x6b7   : > { %v1147_v7 = vsel %vm891_vm3, %v1004_v60, %v1137_v6  ;;  %v2286_v6 = vld [vmem:[%s3343_s13] ss:$0 sm:$0xff] }
 0x6bf   : > { %v1141_v8 = vpop.permute.xlu1 %1140 }
 0x6c0   : > { %v1148_v11 = vsel %vm874_vm9, %v1147_v7, %v1141_v8 }
 0x6c1   : > { %v1145_v13 = vpop.permute.xlu0 %1144 }
 0x6c2   : > { %v1150_v14 = vsel %vm1149_vm10, %v1148_v11, %v1145_v13 }
 0x6c3   : > { %v1151_v16 = vpack.c.bf16 %v1150_v14, %v1150_v14 }
 0x6c5   : > { %2429 = vmatmul.mubr.msk.bf16.vlgmr.msra.gmra.mrb[12].mxu0 %vm714_vm0, %v1151_v16 }
 0x6c6   : > { %2448 = vmatprep.mubr.msk.bf16.mxu0 %vm2754_vm1, %v2753_v4  ;;  %2441 = vmatpush3.bf16.msra.mxu0 %v2623_v38 }
 0x6c7   : > { %2442 = vmatprep.subr.bf16.mxu0 %v2753_v4 }
 0x6ca   : > { %2443 = vmatpush3.bf16.msra.mxu0 %v2624_v39 }
 0x6cb   : > { %2444 = vmatprep.subr.bf16.mxu0 %v2753_v4 }
 0x6ce   : > { %2445 = vmatpush3.bf16.msra.mxu0 %v2625_v40 }
 0x6cf   : > { %2446 = vmatprep.subr.bf16.mxu0 %v2753_v4 }
 0x6d2   : > { %2447 = vmatpush3.bf16.msra.mxu0 %v2626_v41 }
 0x6d3   : > { %2475 = vmatprep.subr.bf16.mxu0 %v2753_v4 }
 0x798   : > { %v1205_v17 = vpop.f32.mrb[12].mxu0 }
 0x799   : > { %v1211_v18 = vadd.f32 %v1205_v17, %v2935_v0  ;;  %v2430_v19 = vpop.f32.mrb[13].mxu0 }
 0x79a   : > { %v1208_v20 = vpop.f32.mrb[14].mxu0 }
 0x79b   : > { %v2431_v21 = vpop.f32.mrb[15].mxu0  ;;  %v1213_v22 = vmul.f32 %v1211_v18, %v1211_v18 }
 0x79d   : > { %v1214_v23 = vsel %vm714_vm0, %v1213_v22, 0.0 }
 0x79e   : > { %1215 = vadd.xlane.f32.xlu1 %v1214_v23 }
 0x82b   : > { %v1216_v0 = vpop.xlane.xlu1 %1215 }
 0x82c   : > { %v1217_v27 = vmul.f32 0.03125, %v1216_v0 }
 0x82e   : > { %v1218_v30 = vadd.f32 1e-06, %v1217_v27 }
 0x830   : > { %2657 = vrsqrt.f32 %v1218_v30 }
 0x83a   : > { %v2658_v31 = vpop.eup %2657 }
 0x83b   : > { %v1220_v33 = vmul.f32 %v2658_v31, %v1211_v18 }
 0x83d   : > { %v1227_v35 = vmul.f32 %v2276_v32, %v1220_v33 }
 0x83f   : > { %v1228_v37 = vpack.c.bf16 %v1227_v35, %v1227_v35 }
 0x841   : > { %2437 = vmatmul.mubr.msk.bf16.vlgmr.msra.gmra.mrb[12].mxu1 %vm714_vm0, %v1228_v37 }
 0x842   : > { %2456 = vmatprep.mubr.msk.bf16.mxu1 %vm2754_vm1, %v2753_v4  ;;  %2453 = vmatpush3.bf16.msra.mxu1 %v2627_v62 }
 0x843   : > { %2454 = vmatprep.subr.bf16.mxu1 %v2753_v4 }
 0x846   : > { %2455 = vmatpush3.bf16.msra.mxu1 %v2628_v63 }
 0x847   : > { %2544 = vmatprep.subr.bf16.mxu1 %v2755_v9 }
 0x914   : > { %v1282_v42 = vpop.f32.mrb[12].mxu1 }
 0x915   : > { %1296 = vrot.lane.b32.xlu0 %v1282_v42, %s2767_s22  ;;  %v2438_v43 = vpop.f32.mrb[13].mxu1  ;;  %v2280_v46 = vmul.f32 -1.442695, %v1282_v42 }
 0x916   : > { %v1285_v44 = vpop.f32.mrb[14].mxu1 }
 0x917   : > { %v2439_v45 = vpop.f32.mrb[15].mxu1  ;;  %2659 = vpow2.f32 %v2280_v46 }
 0x921   : > { %v2660_v47 = vpop.eup %2659 }
 0x922   : > { %v1291_v48 = vadd.f32 1.0, %v2660_v47 }
 0x924   : > { %2661 = vrcp.f32 %v1291_v48 }
 0x92e   : > { %v2662_v49 = vpop.eup %2661 }
 0x92f   : > { %v1294_v50 = vmul.f32 %v2662_v49, %v1282_v42 }
 0x987   : > { %v1297_v51 = vpop.permute.xlu0 %1296 }
 0x988   : > { %v1299_v52 = vmul.f32 %v1297_v51, %v1294_v50 }
 0x98a   : > { %v1300_v53 = vpack.c.bf16 %v1299_v52, %v1299_v52 }
 0x98c   : > { %2449 = vmatmul.mubr.msk.bf16.vlgmr.msra.gmra.mrb[16].mxu0 %vm1333_vm11, %v1300_v53 }
 0x98d   : > { %2477 = vmatprep.mubr.msk.bf16.mxu0 %vm2754_vm1, %v2753_v4 }
 0xa5f   : > { %v1371_v55 = vpop.f32.mrb[16].mxu0 }
 0xa60   : > { %v3116_v56 = vadd.f32 %v1371_v55, %v1211_v18  ;;  %v2450_v57 = vpop.f32.mrb[17].mxu0 }
 0xa61   : > { %v1374_v58 = vpop.f32.mrb[18].mxu0 }
 0xa62   : > { %v2451_v59 = vpop.f32.mrb[19].mxu0  ;;  %v1379_v60 = vmul.f32 %v3116_v56, %v3116_v56 }
 0xa64   : > { %v1380_v61 = vsel %vm714_vm0, %v1379_v60, 0.0 }
 0xa65   : > { %1381 = vadd.xlane.f32.xlu0 %v1380_v61 }
 0xaf2   : > { %v1382_v1 = vpop.xlane.xlu0 %1381 }
 0xaf3   : > { %v1383_v2 = vmul.f32 0.03125, %v1382_v1 }
 0xaf5   : > { %v1384_v3 = vadd.f32 1e-06, %v1383_v2 }
 0xaf7   : > { %2663 = vrsqrt.f32 %v1384_v3 }
 0xb01   : > { %v2664_v5 = vpop.eup %2663 }
 0xb02   : > { %v1386_v7 = vmul.f32 %v2664_v5, %v3116_v56 }
 0xb04   : > { %v1393_v8 = vmul.f32 %v2286_v6, %v1386_v7 }
 0xb06   : > { %v1394_v11 = vpack.c.bf16 %v1393_v8, %v1393_v8 }
 0xb08   : > { %2457 = vmatmul.mubr.msk.bf16.vlgmr.msra.gmra.mrb[16].mxu1 %vm714_vm0, %v1394_v11 }
 0xb09   : > { %2546 = vmatpush3.bf16.msra.mxu1 %v2963_v10  ;;  %2472 = vmatprep.mubr.msk.f32.mxu1 %vm2754_vm1, %v2753_v4 }
 0xb0a   : > { %2547 = vmatprep.subr.bf16.mxu1 %v2755_v9 }
 0xb0d   : > { %2549 = vmatpush3.bf16.msra.mxu1 %v2969_v12 }
 0xb0e   : > { %2550 = vmatprep.subr.bf16.mxu1 %v2755_v9 }
 0xb11   : > { %2552 = vmatpush3.bf16.msra.mxu1 %v2979_v15 }
 0xb12   : > { %2481 = vmatprep.subr.bf16.mxu1 %v2753_v4 }
 0xbdb   : > { %v3142_v13 = vpop.f32.mrb[16].mxu1 }
 0xbdc   : > { %v2458_v14 = vpop.f32.mrb[17].mxu1  ;;  %2473 = vmatmul.mubr.msk.f32.vlgmr.msra.gmra.mrb[2].mxu1 %vm791_vm2, %v3142_v13  ;;  %v1454_v12 = vmul.f32 %v3142_v13, %v3000_v28  ;;  %v1541_v6 = vpack.c.bf16 %v3142_v13, %v3142_v13 }
 0xbdd   : > { %v1451_v10 = vpop.f32.mrb[18].mxu1  ;;  %2483 = vmatprep.mubr.msk.bf16.mxu1 %vm2754_vm1, %v2753_v4 }
 0xbde   : > { %v2459_v16 = vpop.f32.mrb[19].mxu1 }
 0xcaf   : > { %v1524_v17 = vpop.f32.mrb[2].mxu1 }
 0xcb0   : > { %v1528_v9 = vmul.f32 %v1524_v17, %v3005_v29  ;;  %v2474_v15 = vpop.f32.mrb[3].mxu1 }
 0xcb2   : > { %v3151_v18 = vadd.f32 %v1528_v9, %v1454_v12 }
 0xcb4   : > { %v1540_v19 = vpack.c.bf16 %v3151_v18, %v3151_v18  ;;  %v2612_v20 = vpack.i.bf16 %v3142_v13, %v3151_v18 }
 0xcb6   : > { %1549 = vrot.lane.b32.xlu0 %v1540_v19, %s3366_s0  ;;  %v1543_v21 = vrot.slane %v1540_v19, 4 }
 0xcb8   : > { %1544 = vrot.lane.b32.xlu1 %v1543_v21, %s3387_s4  ;;  %s3398_s4 = sld [smem:[#allocation14_spill]] }
 0xcbc   : > { %1673 = vrot.lane.b32.xlu1 %v1540_v19, %s3388_s26 }
 0xd28   : > { %v1550_v22 = vpop.permute.xlu0 %1549 }
 0xd29   : > { %v1554_v28 = vsel %vm891_vm3, %v1550_v22, 0 }
 0xd2a   : > { %2476 = vmatpush3.bf16.xpose.msra.mxu0 %v1554_v28  ;;  %v1545_v29 = vpop.permute.xlu1 %1544 }
 0xd2b   : > { %v1548_v23 = vsel %vm885_vm4, %v1540_v19, %v1545_v29  ;;  %2487 = vmatprep.subr.bf16.mxu0 %v2753_v4 }
 0xd2c   : > { %1671 = vrot.lane.b32.xlu1 %v1548_v23, %s3389_s30  ;;  %s3397_s30 = sshll.u32 %s2929_s23, 2 }
 0xd2e   : > { %v1674_v25 = vpop.permute.xlu1 %1673 }
 0xd2f   : > { %v1679_v26 = vsel %vm891_vm3, %v1674_v25, 0 }
 0xd31   : > { %2478 = vmatmul.mubr.msk.bf16.vlgmr.msra.gmra.mrb[20].mxu0 %vm891_vm3, %v1548_v23 }
 0xd32   : > { %2488 = vmatpush3.bf16.xpose.msra.mxu0 %v1679_v26  ;;  %2489 = vmatprep.mubr.msk.bf16.mxu0 %vm2754_vm1, %v2753_v4 }
 0xd33   : > { %2499 = vmatprep.subr.bf16.mxu0 %v2753_v4 }
 0xd9e   : > { %v1672_v0 = vpop.permute.xlu1 %1671 }
 0xd9f   : > { %2490 = vmatmul.mubr.msk.bf16.vlgmr.msra.gmra.mrb[24].mxu0 %vm891_vm3, %v1672_v0  ;;  %v2629_v0 = vld [vmem:[%s3345_s15] sm:$0xff]  }
 0xda0   : > { %2503 = vmatprep.mubr.msk.bf16.mxu0 %vm2754_vm1, %v2753_v4  ;;  %2500 = vmatpush3.bf16.msra.mxu0 %v2629_v0 }
 0xda1   : > { %2501 = vmatprep.subr.bf16.mxu0 %v2753_v4 }
 0xe04   : > { %v1590_v27 = vpop.f32.mrb[20].mxu0 }
 0xe05   : > { %v1591_v30 = vadd.f32 %v1590_v27, %v3035_v54  ;;  %v2479_v31 = vpop.f32.mrb[21].mxu0  ;;  %v2630_v27 = vld [vmem:[%s3345_s15 + $0x8] sm:$0xff]  }
 0xe06   : > { %v1593_v32 = vpop.f32.mrb[22].mxu0  ;;  %2502 = vmatpush3.bf16.msra.mxu0 %v2630_v27 }
 0xe07   : > { %v1594_v33 = vadd.f32 %v1593_v32, %v3035_v54  ;;  %v2480_v35 = vpop.f32.mrb[23].mxu0  ;;  %v1597_v37 = vsel %vm891_vm3, %v1591_v30, -inf  ;;  %2515 = vmatprep.subr.bf16.mxu0 %v2753_v4 }
 0xe08   : > { %1598 = vmax.xlane.f32.xlu0 %v1597_v37 }
 0xe09   : > { %v1600_v38 = vsel %vm891_vm3, %v1594_v33, -inf }
 0xe0a   : > { %1601 = vmax.xlane.f32.xlu1 %v1600_v38 }
 0xe72   : > { %v1715_v39 = vpop.f32.mrb[24].mxu0 }
 0xe73   : > { %v1716_v40 = vadd.f32 %v1715_v39, %v3035_v54  ;;  %v2491_v41 = vpop.f32.mrb[25].mxu0 }
 0xe74   : > { %v1718_v42 = vpop.f32.mrb[26].mxu0 }
 0xe75   : > { %v1719_v43 = vadd.f32 %v1718_v42, %v3035_v54  ;;  %v2492_v44 = vpop.f32.mrb[27].mxu0  ;;  %v1722_v45 = vsel %vm891_vm3, %v1716_v40, -inf }
 0xe76   : > { %1723 = vmax.xlane.f32.xlu0 %v1722_v45 }
 0xe77   : > { %v1725_v46 = vsel %vm891_vm3, %v1719_v43, -inf }
 0xe7a   : > { %1726 = vmax.xlane.f32.xlu0 %v1725_v46 }
 0xe95   : > { %v1599_v47 = vpop.xlane.xlu0 %1598 }
 0xe96   : > { %v1603_v48 = vsub.f32 %v1591_v30, %v1599_v47 }
 0xe97   : > { %v1602_v49 = vpop.xlane.xlu1 %1601 }
 0xe98   : > { %v1605_v50 = vmul.f32 1.442695, %v1603_v48  ;;  %v1604_v51 = vsub.f32 %v1594_v33, %v1602_v49 }
 0xe9a   : > { %2665 = vpow2.f32 %v1605_v50  ;;  %v1607_v52 = vmul.f32 1.442695, %v1604_v51 }
 0xe9c   : > { %2667 = vpow2.f32 %v1607_v52 }
 0xea4   : > { %v2666_v53 = vpop.eup %2665 }
 0xea5   : > { %v1609_v55 = vsel %vm891_vm3, %v2666_v53, 0.0 }
 0xea6   : > { %v2668_v57 = vpop.eup %2667  ;;  %1610 = vadd.xlane.f32.xlu1 %v1609_v55  ;;  %v2631_v55 = vld [vmem:[%s3347_s17] sm:$0xff]  }
 0xea7   : > { %v1612_v54 = vsel %vm891_vm3, %v2668_v57, 0.0 }
 0xea8   : > { %1613 = vadd.xlane.f32.xlu0 %v1612_v54 }
 0xf03   : > { %v1724_v58 = vpop.xlane.xlu0 %1723 }
 0xf04   : > { %v1728_v59 = vsub.f32 %v1716_v40, %v1724_v58 }
 0xf06   : > { %v1730_v60 = vmul.f32 1.442695, %v1728_v59 }
 0xf07   : > { %v1727_v61 = vpop.xlane.xlu0 %1726 }
 0xf08   : > { %2669 = vpow2.f32 %v1730_v60  ;;  %v1729_v62 = vsub.f32 %v1719_v43, %v1727_v61 }
 0xf0a   : > { %v1732_v63 = vmul.f32 1.442695, %v1729_v62  ;;  %v2298_v62 = vld [vmem:[%s3346_s16] ss:$0 sm:$0xff] }
 0xf0c   : > { %2671 = vpow2.f32 %v1732_v63 }
 0xf12   : > { %v2670_v1 = vpop.eup %2669 }
 0xf13   : > { %v1734_v2 = vsel %vm891_vm3, %v2670_v1, 0.0 }
 0xf14   : > { %1735 = vadd.xlane.f32.xlu1 %v1734_v2 }
 0xf16   : > { %v2672_v3 = vpop.eup %2671 }
 0xf17   : > { %v1737_v5 = vsel %vm891_vm3, %v2672_v3, 0.0 }
 0xf18   : > { %1738 = vadd.xlane.f32.xlu0 %v1737_v5  ;;  %v2634_v5 = vld [vmem:[%s3348_s18 + $0x8] sm:$0xff]  }
 0xf25   : > { %1621 = vrot.lane.b32.xlu1 %v1541_v6, %s3390_s1  ;;  %s3392_s1 = smov 8  }
 0xf2e   : > { %1745 = vrot.lane.b32.xlu0 %v1541_v6, %s3391_s24  ;;  %s3393_s24 = smov 16   ;;  %v2635_v6 = vld [vmem:[%s3348_s18 + $0x10] sm:$0xff]  }
 0xf33   : > { %v1611_v8 = vpop.xlane.xlu1 %1610 }
 0xf35   : > { %v1614_v7 = vpop.xlane.xlu0 %1613 }
 0xf36   : > { %2673 = vrcp.f32 %v1614_v7  ;;  %v2636_v7 = vld [vmem:[%s3348_s18 + $0x18] sm:$0xff]  }
 0xf37   : > { %2675 = vrcp.f32 %v1611_v8 }
 0xf40   : > { %v2674_v11 = vpop.eup %2673 }
 0xf41   : > { %v2676_v10 = vpop.eup %2675  ;;  %v1618_v16 = vmul.f32 %v2674_v11, %v2668_v57 }
 0xf42   : > { %v1616_v9 = vmul.f32 %v2676_v10, %v2666_v53 }
 0xf44   : > { %v1619_v19 = vpack.c.bf16 %v1618_v16, %v1616_v9 }
 0xfa1   : > { %v1736_v14 = vpop.xlane.xlu1 %1735 }
 0xfa2   : > { %2677 = vrcp.f32 %v1736_v14 }
 0xfa5   : > { %v1622_v17 = vpop.permute.xlu1 %1621  ;;  %v1739_v12 = vpop.xlane.xlu0 %1738 }
 0xfa6   : > { %v1627_v15 = vsel %vm885_vm4, %v1622_v17, 0  ;;  %2679 = vrcp.f32 %v1739_v12 }
 0xfa7   : > { %2482 = vmatpush3.bf16.msra.mxu1 %v1627_v15 }
 0xfa8   : > { %2493 = vmatprep.subr.bf16.mxu1 %v2753_v4 }
 0xfa9   : > { %v1746_v21 = vpop.permute.xlu0 %1745 }
 0xfaa   : > { %v1751_v22 = vsel %vm885_vm4, %v1746_v21, 0  ;;  %2484 = vmatmul.mubr.msk.bf16.vlgmr.msra.gmra.mrb[20].mxu1 %vm891_vm3, %v1619_v19 }
 0xfab   : > { %2494 = vmatpush3.bf16.msra.mxu1 %v1751_v22  ;;  %2495 = vmatprep.mubr.msk.bf16.mxu1 %vm2754_vm1, %v2753_v4 }
 0xfac   : > { %2507 = vmatprep.subr.bf16.mxu1 %v2753_v4  ;;  %v2678_v28 = vpop.eup %2677 }
 0xfad   : > { %v1741_v23 = vmul.f32 %v2678_v28, %v2670_v1 }
 0xfb0   : > { %v2680_v29 = vpop.eup %2679 }
 0xfb1   : > { %v1743_v25 = vmul.f32 %v2680_v29, %v2672_v3  ;;  %v2633_v3 = vld [vmem:[%s3348_s18] sm:$0xff]  }
 0xfb3   : > { %v1744_v26 = vpack.c.bf16 %v1743_v25, %v1741_v23 }
 0xfb5   : > { %2496 = vmatmul.mubr.msk.bf16.vlgmr.msra.gmra.mrb[24].mxu1 %vm891_vm3, %v1744_v26 }
 0xfb6   : > { %2511 = vmatprep.mubr.msk.bf16.mxu1 %vm2754_vm1, %v2753_v4  ;;  %2508 = vmatpush3.bf16.msra.mxu1 %v2631_v55 }
 0xfb7   : > { %2509 = vmatprep.subr.bf16.mxu1 %v2753_v4 }
0x107d   : > { %v1663_v30 = vpop.f32.mrb[20].mxu1 }
0x107e   : > { %v2485_v31 = vpop.f32.mrb[21].mxu1 }
0x107f   : > { %v1666_v32 = vpop.f32.mrb[22].mxu1  ;;  %v2638_v31 = vld [vmem:[%s3396_s6 + $0x8] sm:$0xff]  }
0x1080   : > { %1795 = vrot.lane.b32.xlu1 %v1666_v32, %s3392_s1  ;;  %v2486_v33 = vpop.f32.mrb[23].mxu1 }
0x1088   : > { %v1787_v35 = vpop.f32.mrb[24].mxu1 }
0x1089   : > { %1799 = vrot.lane.b32.xlu1 %v1787_v35, %s3393_s24  ;;  %v2497_v37 = vpop.f32.mrb[25].mxu1  ;;  %s3365_s24 = sshll.u32 %s2929_s23, 2  ;;  %s657_s23 = sand.u32 1, %s2743_s25  }
0x108a   : > { %v1790_v38 = vpop.f32.mrb[26].mxu1  ;;  %s682_s26 = scalar_lea.vmem %s3350_s20, %s3365_s24  ;;  %s2113_s24 = scalar_lea.sflag [#allocation3], %s657_s23 }
0x108b   : > { %1803 = vrot.lane.b32.xlu0 %v1790_v38, %s3394_s29  ;;  %v2498_v39 = vpop.f32.mrb[27].mxu1  ;;  %s2313_s29 = sshll.u32 %s2900_s3, 7  ;;  %s2768_s3 = smov [#allocation2]  }
0x108c   : > { %v2308_v39 = vld [vmem:[%s3398_s4] ss:$0 sm:$0xff] }
0x10f2   : > { %v1796_v40 = vpop.permute.xlu1 %1795 }
0x10f3   : > { %v1806_v41 = vsel %vm891_vm3, %v1663_v30, %v1796_v40  ;;  %v2637_v30 = vld [vmem:[%s3396_s6] sm:$0xff]  }
0x10fb   : > { %v1800_v42 = vpop.permute.xlu1 %1799 }
0x10fc   : > { %v1807_v43 = vsel %vm874_vm9, %v1806_v41, %v1800_v42 }
0x10fd   : > { %v1804_v44 = vpop.permute.xlu0 %1803 }
0x10fe   : > { %v1808_v45 = vsel %vm1149_vm10, %v1807_v43, %v1804_v44 }
0x10ff   : > { %v1809_v46 = vpack.c.bf16 %v1808_v45, %v1808_v45 }
0x1101   : > { %2504 = vmatmul.mubr.msk.bf16.vlgmr.msra.gmra.mrb[28].mxu0 %vm714_vm0, %v1809_v46 }
0x1102   : > { %2523 = vmatprep.mubr.msk.bf16.mxu0 %vm2754_vm1, %v2753_v4  ;;  %2516 = vmatpush3.bf16.msra.mxu0 %v2633_v3 }
0x1103   : > { %2517 = vmatprep.subr.bf16.mxu0 %v2753_v4 }
0x1106   : > { %2518 = vmatpush3.bf16.msra.mxu0 %v2634_v5 }
0x1107   : > { %2519 = vmatprep.subr.bf16.mxu0 %v2753_v4 }
0x110a   : > { %2520 = vmatpush3.bf16.msra.mxu0 %v2635_v6 }
0x110b   : > { %2521 = vmatprep.subr.bf16.mxu0 %v2753_v4 }
0x110e   : > { %2522 = vmatpush3.bf16.msra.mxu0 %v2636_v7 }
0x11d4   : > { %v1863_v47 = vpop.f32.mrb[28].mxu0 }
0x11d5   : > { %v1869_v48 = vadd.f32 %v1863_v47, %v3116_v56  ;;  %v2505_v49 = vpop.f32.mrb[29].mxu0  ;;  %v2632_v56 = vld [vmem:[%s3347_s17 + $0x8] sm:$0xff]  }
0x11d6   : > { %v1866_v50 = vpop.f32.mrb[30].mxu0  ;;  %2510 = vmatpush3.bf16.msra.mxu1 %v2632_v56 }
0x11d7   : > { %v2506_v51 = vpop.f32.mrb[31].mxu0  ;;  %v1871_v52 = vmul.f32 %v1869_v48, %v1869_v48  ;;  %2527 = vmatprep.subr.bf16.mxu1 %v2753_v4 }
0x11d9   : > { %v1872_v53 = vsel %vm714_vm0, %v1871_v52, 0.0 }
0x11da   : > { %1873 = vadd.xlane.f32.xlu1 %v1872_v53 }
0x11eb   : > { %2608 = vrot.lane.b32.xlu1 %v2607_v36, %s3366_s0  ;;  %s3395_s0 = smov 96  }
0x1267   : > { %v1874_v57 = vpop.xlane.xlu1 %1873 }
0x1268   : > { %v1875_v54 = vmul.f32 0.03125, %v1874_v57 }
0x126a   : > { %v1876_v58 = vadd.f32 1e-06, %v1875_v54 }
0x126b   : > { %v2609_v24 = vpop.permute.xlu1 %2608 }
0x126c   : > { %2681 = vrsqrt.f32 %v1876_v58  ;;  %v2611_v34 = vunpack.i.h.bf16 %v2609_v24  ;;  %v2610_v36 = vunpack.i.l.bf16 %v2609_v24 }
0x126e   : > { %v875_v59 = vsel %vm874_vm9, %v2610_v36, %v2611_v34 }
0x126f   : > { %v876_v60 = vpack.c.bf16 %v875_v59, %v875_v59 }
0x1271   : > { %878 = vst.msk [vmem:[%s682_s26] sm:$0xf] %vm877_vm12, %v876_v60  ;;  %s2260_s26 = sshll.u32 %s657_s23, 3 }
0x1272   : > { %s659_s1 = scalar_lea.vmem [#allocation2], %s2260_s26  ;;  %s2693_s26 = sshll.u32 %s2768_s3, 4  ;;  %s2694_s26 = int_to_ptr.vmem [resolvable:$false] %s2693_s26 }
0x1273   : > { %s2695_s7 = scalar_lea.vmem %s2694_s26, 256 }
0x1276   : > { %v2682_v61 = vpop.eup %2681 }
0x1277   : > { %v1878_v63 = vmul.f32 %v2682_v61, %v1869_v48 }
0x1279   : > { %v1885_v1 = vmul.f32 %v2298_v62, %v1878_v63 }
0x127b   : > { %v1886_v2 = vpack.c.bf16 %v1885_v1, %v1885_v1 }
0x127d   : > { %2512 = vmatmul.mubr.msk.bf16.vlgmr.msra.gmra.mrb[28].mxu1 %vm714_vm0, %v1886_v2 }
0x127e   : > { %2531 = vmatprep.mubr.msk.bf16.mxu1 %vm2754_vm1, %v2753_v4  ;;  %2528 = vmatpush3.bf16.msra.mxu1 %v2637_v30 }
0x127f   : > { %2529 = vmatprep.subr.bf16.mxu1 %v2753_v4 }
0x1282   : > { %2530 = vmatpush3.bf16.msra.mxu1 %v2638_v31 }
0x1350   : > { %v1940_v8 = vpop.f32.mrb[28].mxu1 }
0x1351   : > { %1954 = vrot.lane.b32.xlu0 %v1940_v8, %s2767_s22  ;;  %v2513_v11 = vpop.f32.mrb[29].mxu1  ;;  %v2302_v16 = vmul.f32 -1.442695, %v1940_v8  ;;  %s3290_s22 = scalar_lea.hbm %s3349_s19, %s2313_s29 }
0x1352   : > { %v1943_v14 = vpop.f32.mrb[30].mxu1 }
0x1353   : > { %v2514_v10 = vpop.f32.mrb[31].mxu1  ;;  %2683 = vpow2.f32 %v2302_v16 }
0x135d   : > { %v2684_v17 = vpop.eup %2683 }
0x135e   : > { %v1949_v12 = vadd.f32 1.0, %v2684_v17 }
0x1360   : > { %2685 = vrcp.f32 %v1949_v12 }
0x136a   : > { %v2686_v9 = vpop.eup %2685 }
0x136b   : > { %v1952_v15 = vmul.f32 %v2686_v9, %v1940_v8 }
0x13c3   : > { %v1955_v19 = vpop.permute.xlu0 %1954 }
0x13c4   : > { %v1957_v21 = vmul.f32 %v1955_v19, %v1952_v15 }
0x13c6   : > { %v1958_v22 = vpack.c.bf16 %v1957_v21, %v1957_v21 }
0x13c8   : > { %2524 = vmatmul.mubr.msk.bf16.vlgmr.msra.gmra.mrb[32].mxu0 %vm1333_vm11, %v1958_v22 }
0x149b   : > { %v2028_v28 = vpop.f32.mrb[32].mxu0 }
0x149c   : > { %v2034_v29 = vadd.f32 %v2028_v28, %v1869_v48  ;;  %v2525_v23 = vpop.f32.mrb[33].mxu0 }
0x149d   : > { %v2031_v25 = vpop.f32.mrb[34].mxu0 }
0x149e   : > { %v2526_v26 = vpop.f32.mrb[35].mxu0  ;;  %v2036_v0 = vmul.f32 %v2034_v29, %v2034_v29 }
0x14a0   : > { %v2037_v27 = vsel %vm714_vm0, %v2036_v0, 0.0 }
0x14a1   : > { %2038 = vadd.xlane.f32.xlu0 %v2037_v27 }
0x14b7   : > { %2613 = vrot.lane.b32.xlu0 %v2612_v20, %s3395_s0  ;;  %s686_s0 = scalar_lea.vmem %s3351_s21, %s3397_s30  ;;  %s2134_s30 = sshll.u32 %s659_s1, 4  ;;  %s3285_s30 = int_to_ptr.vmem [resolvable:$true] %s2134_s30 }
0x14b8   : > { %s2689_s4 = scalar_lea.vmem %s3285_s30, 128  ;;  %p2696_p0 = scmp.lt.s32.totalorder %s3285_s30, %s2694_s26 }
0x14b9   : > { %p2690_p11 = scmp.ne.s32.totalorder %s3285_s30, %s2689_s4  ;;  %p2697_p1 = scmp.lt.s32.totalorder %s2695_s7, %s2689_s4 }
0x14bb   : > { %p2691_p12 = pnand %p2690_p11, %p2917_p5  ;;  %p2698_p2 = por %p2697_p1, %p2696_p0 }
0x14bd   : > { %p2692_p13 = pneg %p2691_p12 }
0x14bf   : > { %p2699_p3 = pnand %p2698_p2, %p2692_p13 }
0x152e   : > { %v2039_v32 = vpop.xlane.xlu0 %2038 }
0x152f   : > { %v2040_v33 = vmul.f32 0.03125, %v2039_v32 }
0x1531   : > { %v2041_v35 = vadd.f32 1e-06, %v2040_v33 }
0x1532   : > { %v2614_v37 = vpop.permute.xlu0 %2613 }
0x1533   : > { %2687 = vrsqrt.f32 %v2041_v35  ;;  %v2616_v13 = vunpack.i.h.bf16 %v2614_v37  ;;  %v2615_v18 = vunpack.i.l.bf16 %v2614_v37 }
0x1535   : > { %v1537_v4 = vsel %vm874_vm9, %v2615_v18, %v2616_v13 }
0x1536   : > { %v1538_v20 = vpack.c.bf16 %v1537_v4, %v1537_v4 }
0x1538   : > { %1539 = vst.msk [vmem:[%s686_s0] sm:$0xf] %vm877_vm12, %v1538_v20 }
0x153d   : > { %v2688_v38 = vpop.eup %2687 }
0x153e   : > { %v2043_v40 = vmul.f32 %v2688_v38, %v2034_v29 }
0x1540   : > { %v2050_v41 = vmul.f32 %v2308_v39, %v2043_v40 }
0x1542   : > { %v2051_v42 = vpack.c.bf16 %v2050_v41, %v2050_v41 }
0x1544   : > { %2532 = vmatmul.mubr.msk.bf16.vlgmr.msra.gmra.mrb[32].mxu1 %vm714_vm0, %v2051_v42 }
0x1617   : > { %v2105_v43 = vpop.f32.mrb[32].mxu1 }
0x1618   : > { %2111 = vst [vmem:[%s659_s1] sm:$0xff] %v2105_v43  ;;  %v2533_v44 = vpop.f32.mrb[33].mxu1 }
0x1619   : > { %v2108_v45 = vpop.f32.mrb[34].mxu1 }
0x161a   : > { %2702 = shalt.err (!%p2699_p3)
}
0x161b   : > { %s2703_s6 = scalar_lea.hbm %s3290_s22, 128  ;;  %s2707_s29 = scalar_lea.hbm %s3349_s19, 256 }
0x161c   : > { %p2704_p4 = scmp.ne.s32.totalorder %s3290_s22, %s2703_s6  ;;  %p2708_p9 = scmp.lt.u32.totalorder %s3290_s22, %s3349_s19 }
0x161d   : > { %p2709_p10 = scmp.lt.u32.totalorder %s2707_s29, %s2703_s6  ;;  %p2711_p12 = scmp.lt.u32.totalorder %s2703_s6, %s3290_s22 }
0x161e   : > { %p2705_p7 = pnand %p2704_p4, %p2917_p5 }
0x161f   : > { %p2710_p11 = por %p2709_p10, %p2708_p9 }
0x1620   : > { %p2706_p8 = pneg %p2705_p7 }
0x1621   : > { %p2712_p13 = por %p2711_p12, %p2710_p11 }
0x1623   : > { %p2713_p0 = pnand %p2712_p13, %p2706_p8 }
0x1625   : > { %2716 = shalt.err (!%p2713_p0)
}
0x1626   : > { %2553 = dma.vmem_to_hbm [thread:$0]  (%p2917_p5), %s3285_s30, 128, %s3290_s22, %s2113_s24   ;;  %v2534_v46 = vpop.f32.mrb[35].mxu1 }
0x1627 PF: > { %p2559_p1 = scmp.ge.s32.totalorder %s2751_s27, 2  ;;  %s2152_s4 = sand.u32 1, %s2739_s2  }
0x1628   : > { %s2153_s26 = scalar_lea.sflag [#allocation3], %s2152_s4 }
0x1629   : > { %p2556_p2 = pnand %p2559_p1, %p2921_p6 }
0x162b   : > { %2734 = dma.done.wait (!%p2556_p2), %s2153_s26, 128  }
0x162c   : > { %2736 = vsyncadd (!%p2556_p2), %s2153_s26, 4294967168  ;;  %s3400_s27 = sld [smem:[#allocation6_spill]]  ;;  %s3401_s6 = sld [smem:[#allocation5_spill]] }
0x162d   : > { %s3402_s26 = sld [smem:[#allocation7_spill]]  ;;  %s3403_s2 = smov %s2743_s25 }
0x1632   : > { %p32_p3 = scmp.ge.s32.totalorder %s3400_s27, 4   ;;  %s3404_s25 = smov %s3401_s6 }
0x1634   :  { %34 = sbr.rel (!%p32_p3) target bundleno = 12 (0xc), region = 158 }
0x163b   :  { %2172 = vsyncpa [#allocation3], 1 }
0x163c   :  { %2174 = vsyncpa [#allocation3 + $0x1], 1 }

</bundles_post_ra>
